<compile_context>
chip_gen: v5e
topology: v5e:2x2
jax: 0.10.0
libtpu: 0.0.40
codegen_flags: <defaults>
</compile_context>

<pallas_src>
import jax
import jax.numpy as jnp
import numpy as np
from jax.experimental import pallas as pl
from jax.experimental.pallas import tpu as pltpu


# ----------------------------------------------------------------------------
# Fused kernel: per-(direction, time-block) input projection + GRU recurrence.
# ----------------------------------------------------------------------------
def _bigru_fused_kernel(x_ref, wi_ref, wh_ref, gib_ref, bhn_ref,
                        out_ref, hfin_ref, gi_scr, h_scr):
    # x_ref:   (T_blk*B, E)  bf16  embedded inputs for this time block
    # wi_ref:  (E, 3H)       bf16  input weights, gate-stacked [r | z | n]
    # wh_ref:  (H, 3H)       bf16  hidden weights, gate-stacked [r | z | n]
    # gib_ref: (1, 3H)       f32   b_ih + folded b_hh[r], b_hh[z]
    # bhn_ref: (1, H)        f32   b_hh[n] (must stay inside r*(gh_n + b_hn))
    # out_ref: (T_blk, B, H) f32   this direction's half of the (S, B, 2H) output
    # hfin_ref:(B, H)        f32   this direction's half of the (B, 2H) final hidden
    # gi_scr:  (T_blk*B,3H)  f32   block-local input projection (VMEM only)
    # h_scr:   (B, H)        f32   hidden state carried across time blocks
    d = pl.program_id(0)               # direction: 0 = forward, 1 = backward
    k = pl.program_id(1)               # time-block index (processing order)
    t_blk, bsz, hid = out_ref.shape

    @pl.when(k == 0)
    def _():
        h_scr[...] = jnp.zeros_like(h_scr)

    # ---- Block preamble (off the serial path): fused input projection. ----
    # One bf16 MXU matmul for all T_blk timesteps of this block; the f32 result
    # (with folded biases) stays in VMEM — no HBM round trip for gi.
    gi_scr[...] = (
        jnp.dot(x_ref[...], wi_ref[...], preferred_element_type=jnp.float32)
        + gib_ref[...])

    wh = wh_ref[...]                   # (H, 3H) bf16
    bhn = bhn_ref[...]                 # (1, H)  f32

    def step(t, h):
        # Forward walks the block front-to-back; backward walks it back-to-front
        # (its block was already fetched from the mirrored time-block index).
        tt = t + d * (t_blk - 1 - 2 * t)
        row = pl.multiple_of(tt * bsz, bsz)
        gi = gi_scr[pl.ds(row, bsz), :]                                # (B, 3H)
        gh = jnp.dot(h.astype(wh.dtype), wh,
                     preferred_element_type=jnp.float32)               # (B, 3H)
        r = jax.nn.sigmoid(gi[:, :hid] + gh[:, :hid])
        z = jax.nn.sigmoid(gi[:, hid:2 * hid] + gh[:, hid:2 * hid])
        n = jnp.tanh(gi[:, 2 * hid:] + r * (gh[:, 2 * hid:] + bhn))
        h_new = (1.0 - z) * n + z * h
        out_ref[tt] = h_new
        return h_new

    # Partial unroll bounds vreg pressure at large B*H while still letting the
    # LLO scheduler overlap the gi loads / out stores with the MXU dot.
    h_last = jax.lax.fori_loop(0, t_blk, step, h_scr[...],
                               unroll=min(t_blk, 8))
    h_scr[...] = h_last

    @pl.when(k == pl.num_programs(1) - 1)
    def _():
        hfin_ref[...] = h_last


# ----------------------------------------------------------------------------
# VMEM-aware tiling.
# ----------------------------------------------------------------------------
def _vmem_limit_bytes():
    """Scoped-VMEM request: half of physical VMEM (64 MiB v5e/v6e, 32 MiB v7x)."""
    phys = 128 << 20
    try:
        phys = int(getattr(pltpu.get_tpu_info(), "vmem_capacity_bytes", phys))
    except Exception:
        pass
    return int(min(phys // 2, 64 << 20))


def _pick_time_block(seq_len, batch, emb_size, hid, budget_bytes):
    """Largest divisor of seq_len whose pipelined working set fits the budget."""
    h3 = 3 * hid
    # T_blk-independent bytes (double-buffered weight/bias blocks, final-hidden
    # output block, carried-h scratch).
    fixed = 2 * (emb_size * h3 + hid * h3) * 2      # wi + wh blocks (bf16, x2 buffers)
    fixed += 2 * (h3 + hid) * 4                     # bias blocks (f32, x2 buffers)
    fixed += 2 * batch * hid * 4                    # final-hidden output block
    fixed += batch * hid * 4                        # h scratch
    # Bytes per timestep resident in VMEM.
    per_t = batch * (2 * emb_size * 2               # x block (bf16, double-buffered)
                     + 2 * hid * 4                  # out block (f32, double-buffered)
                     + h3 * 4)                      # gi scratch (f32)
    cap = (budget_bytes - fixed) // per_t if per_t > 0 else seq_len
    cap = int(max(1, min(cap, 64, seq_len)))
    divs = [t for t in range(1, cap + 1) if seq_len % t == 0]
    aligned = [t for t in divs if t == seq_len or (t * batch) % 8 == 0]
    return (aligned or divs)[-1]


# ----------------------------------------------------------------------------
# Wrapper around pallas_call.
# ----------------------------------------------------------------------------
def _bigru_pallas(x2d, seq_len, batch, params, *, time_block=None):
    """x2d: [S*B, E] bf16 time-major embedded input (row blocks = time blocks).

    Returns (output [S, B, 2H] f32 in natural time order, final hidden [B, 2H]).
    """
    emb_size = x2d.shape[1]
    hid = params["wh"].shape[1]
    h3 = 3 * hid
    # NOTE: the fused (S, B, 2H) output layout needs H % 128 == 0 for unmasked
    # lane-dense stores (pad H otherwise).

    vmem_limit = _vmem_limit_bytes()
    t_blk = time_block or _pick_time_block(
        seq_len, batch, emb_size, hid, budget_bytes=(vmem_limit * 3) // 4)
    num_blocks = seq_len // t_blk

    def tb_idx(d, k):
        # forward (d=0): block k ; backward (d=1): mirrored block num_blocks-1-k
        return k + d * (num_blocks - 1 - 2 * k)

    out_sb, hfin = pl.pallas_call(
        _bigru_fused_kernel,
        out_shape=(
            jax.ShapeDtypeStruct((seq_len, batch, 2 * hid), jnp.float32),
            jax.ShapeDtypeStruct((batch, 2 * hid), jnp.float32),
        ),
        grid_spec=pltpu.PrefetchScalarGridSpec(
            num_scalar_prefetch=0,
            grid=(2, num_blocks),
            in_specs=[
                pl.BlockSpec((t_blk * batch, emb_size),
                             lambda d, k: (tb_idx(d, k), 0)),
                pl.BlockSpec((None, emb_size, h3), lambda d, k: (d, 0, 0)),
                pl.BlockSpec((None, hid, h3), lambda d, k: (d, 0, 0)),
                pl.BlockSpec((None, 1, h3), lambda d, k: (d, 0, 0)),
                pl.BlockSpec((None, 1, hid), lambda d, k: (d, 0, 0)),
            ],
            out_specs=[
                # Both directions write straight into one (S, B, 2H) array:
                # the last-axis block index is the direction d.
                pl.BlockSpec((t_blk, batch, hid),
                             lambda d, k: (tb_idx(d, k), 0, d)),
                pl.BlockSpec((batch, hid), lambda d, k: (0, d)),
            ],
            scratch_shapes=[
                pltpu.VMEM((t_blk * batch, h3), jnp.float32),
                pltpu.VMEM((batch, hid), jnp.float32),
            ],
        ),
        compiler_params=pltpu.CompilerParams(
            # d axis: independent recurrences (two TensorCores on v7x);
            # k axis: sequential recurrence — must stay "arbitrary".
            dimension_semantics=("parallel", "arbitrary"),
            vmem_limit_bytes=int(vmem_limit)),
    )(x2d, params["wi"], params["wh"], params["gi_bias"], params["bhn"])
    return out_sb, hfin


# ----------------------------------------------------------------------------
# EncoderRNN forward.
# ----------------------------------------------------------------------------
@jax.jit
def encoder_rnn_forward(src, params):
    """src: [batch, seq] int32 -> (output [B, S, 2H], hidden_concat [B, 2H])."""
    # TODO(synk): embedding row-gather and the final (S,B,2H)->(B,S,2H) transpose
    # stay in XLA; gathering time-major via src.T avoids transposing floats.
    x_tm = params["embedding"][src.T].astype(jnp.bfloat16)    # [S, B, E]
    seq_len, batch, emb_size = x_tm.shape
    x2d = x_tm.reshape(seq_len * batch, emb_size)             # free reshape

    out_sb, hidden_concat = _bigru_pallas(x2d, seq_len, batch, params)

    output = jnp.transpose(out_sb, (1, 0, 2))                 # [B, S, 2H]
    return output, hidden_concat


# ----------------------------------------------------------------------------
# Deterministic parameter construction (PyTorch weight layout -> kernel layout).
# ----------------------------------------------------------------------------
def make_params(key, vocab_size, emb_size, hidden_size, pad_idx=0):
    keys = jax.random.split(key, 9)
    scale = 1.0 / np.sqrt(hidden_size)

    def u(k, shape):
        return jax.random.uniform(k, shape, jnp.float32, -scale, scale)

    # Embedding: N(0,1) init, padding row zeroed (matches nn.Embedding(padding_idx)).
    emb = jax.random.normal(keys[0], (vocab_size, emb_size), jnp.float32)
    emb = emb.at[pad_idx].set(0.0)

    # PyTorch GRU weights: [3H, E]/[3H, H] with gate order (r, z, n).
    def direction(k_w_ih, k_w_hh, k_b_ih, k_b_hh):
        w_ih = u(k_w_ih, (3 * hidden_size, emb_size))
        w_hh = u(k_w_hh, (3 * hidden_size, hidden_size))
        b_ih = u(k_b_ih, (3 * hidden_size,))
        b_hh = u(k_b_hh, (3 * hidden_size,))
        # Kernel layout: transposed, gate-stacked bf16 weights (MXU-native);
        # b_ih + b_hh[r], b_hh[z] folded into the precomputed projection bias
        # (b_hh[n] must stay inside the loop: n = tanh(gi_n + r*(gh_n + b_hn))).
        wi = w_ih.T.astype(jnp.bfloat16)                       # (E, 3H)
        wh = w_hh.T.astype(jnp.bfloat16)                       # (H, 3H)
        gi_bias = b_ih + jnp.concatenate(
            [b_hh[:2 * hidden_size], jnp.zeros((hidden_size,), jnp.float32)])
        gi_bias = gi_bias.reshape(1, 3 * hidden_size)          # (1, 3H) f32
        bhn = b_hh[2 * hidden_size:].reshape(1, hidden_size)   # (1, H)  f32
        return (b_ih, b_hh), (wi, wh, gi_bias, bhn)

    biases_f, kf = direction(keys[1], keys[2], keys[3], keys[4])
    biases_b, kb = direction(keys[5], keys[6], keys[7], keys[8])

    params = dict(
        embedding=emb,                       # (V, E) f32
        wi=jnp.stack([kf[0], kb[0]]),        # (2, E, 3H) bf16
        wh=jnp.stack([kf[1], kb[1]]),        # (2, H, 3H) bf16
        gi_bias=jnp.stack([kf[2], kb[2]]),   # (2, 1, 3H) f32
        bhn=jnp.stack([kf[3], kb[3]]),       # (2, 1, H)  f32
    )

    # Reference params carry the SAME bf16-rounded weights/embedding (back in
    # f32) so the correctness check isolates kernel implementation errors from
    # the intentional bf16-MXU precision policy.
    def ref_dir(biases, kq):
        b_ih, b_hh = biases
        return (kq[0].astype(jnp.float32).T,     # (3H, E)
                kq[1].astype(jnp.float32).T,     # (3H, H)
                b_ih, b_hh)

    ref_params = dict(
        embedding=emb.astype(jnp.bfloat16).astype(jnp.float32),
        fwd=ref_dir(biases_f, kf),
        bwd=ref_dir(biases_b, kb),
    )
    return params, ref_params


# ----------------------------------------------------------------------------
# Pure-JAX reference (mirrors torch.nn.GRU math; f32 arithmetic on bf16-rounded
# parameters, with the per-step bf16 h feed mirrored so the check is tight).
# ----------------------------------------------------------------------------
def encoder_rnn_reference(src, ref_params):
    emb = ref_params["embedding"][src]           # [B, S, E]
    x = jnp.transpose(emb, (1, 0, 2))            # [S, B, E]

    def run(dir_params, reverse):
        w_ih, w_hh, b_ih, b_hh = dir_params
        H = w_hh.shape[1]

        def cell(h, x_t):
            h_q = h.astype(jnp.bfloat16).astype(jnp.float32)
            gi = x_t @ w_ih.T + b_ih
            gh = h_q @ w_hh.T + b_hh
            r = jax.nn.sigmoid(gi[:, :H] + gh[:, :H])
            z = jax.nn.sigmoid(gi[:, H:2 * H] + gh[:, H:2 * H])
            n = jnp.tanh(gi[:, 2 * H:] + r * gh[:, 2 * H:])
            h_new = (1.0 - z) * n + z * h
            return h_new, h_new

        xs = x[::-1] if reverse else x
        h0 = jnp.zeros((x.shape[1], H), jnp.float32)
        hT, ys = jax.lax.scan(cell, h0, xs)
        if reverse:
            ys = ys[::-1]
        return ys, hT

    out_f, h_f = run(ref_params["fwd"], reverse=False)
    out_b, h_b = run(ref_params["bwd"], reverse=True)
    output = jnp.transpose(jnp.concatenate([out_f, out_b], -1), (1, 0, 2))
    hidden_concat = jnp.concatenate([h_f, h_b], -1)
    return output, hidden_concat


if __name__ == "__main__":
    # Lane/sublane-aligned small shapes: H % 128 == 0 (gate slices + output
    # stores are whole-vreg), B % 8 == 0 (f32 sublane rows).
    VOCAB, EMB, HID = 64, 128, 128
    BATCH, SEQ = 8, 8
    PAD_IDX = 0

    key = jax.random.PRNGKey(0)
    k_src, k_params = jax.random.split(key)

    src = jax.random.randint(k_src, (BATCH, SEQ), 0, VOCAB, dtype=jnp.int32)
    params, ref_params = make_params(k_params, VOCAB, EMB, HID, PAD_IDX)

    output, hidden_concat = encoder_rnn_forward(src, params)
    jax.block_until_ready((output, hidden_concat))

    assert output.shape == (BATCH, SEQ, 2 * HID)
    assert hidden_concat.shape == (BATCH, 2 * HID)

    ref_out, ref_hid = encoder_rnn_reference(src, ref_params)
    np.testing.assert_allclose(np.asarray(output), np.asarray(ref_out),
                               rtol=5e-3, atol=5e-3)
    np.testing.assert_allclose(np.asarray(hidden_concat), np.asarray(ref_hid),
                               rtol=5e-3, atol=5e-3)

    print("KERNEL_OK")
</pallas_src>

<mosaic_0001>
module attributes {stable_mosaic.version = 11 : i64} {
  func.func @_bigru_fused_kernel(%arg0: i32, %arg1: i32, %arg2: memref<64x128xbf16, #tpu.memory_space<vmem>>, %arg3: memref<1x128x384xbf16, #tpu.memory_space<vmem>>, %arg4: memref<1x128x384xbf16, #tpu.memory_space<vmem>>, %arg5: memref<1x1x384xf32, #tpu.memory_space<vmem>>, %arg6: memref<1x1x128xf32, #tpu.memory_space<vmem>>, %arg7: memref<8x8x128xf32, #tpu.memory_space<vmem>>, %arg8: memref<8x128xf32, #tpu.memory_space<vmem>>, %arg9: memref<64x384xf32, #tpu.memory_space<vmem>>, %arg10: memref<8x128xf32, #tpu.memory_space<vmem>>) attributes {dimension_semantics = [#tpu.dimension_semantics<parallel>, #tpu.dimension_semantics<arbitrary>], iteration_bounds = array<i64: 2, 1>, scalar_prefetch = 0 : i64, scratch_operands = 2 : i64, tpu.core_type = #tpu.core_type<tc>, window_params = [{transform_indices = @transform_0, window_bounds = array<i64: 64, 128>}, {transform_indices = @transform_1, window_bounds = array<i64: 1, 128, 384>}, {transform_indices = @transform_2, window_bounds = array<i64: 1, 128, 384>}, {transform_indices = @transform_3, window_bounds = array<i64: 1, 1, 384>}, {transform_indices = @transform_4, window_bounds = array<i64: 1, 1, 128>}, {transform_indices = @transform_5, window_bounds = array<i64: 8, 8, 128>}, {transform_indices = @transform_6, window_bounds = array<i64: 8, 128>}]} {
    %c0_i32 = arith.constant 0 : i32
    %0 = arith.cmpi eq, %arg1, %c0_i32 : i32
    %1 = arith.extui %0 : i1 to i32
    %c0_i32_0 = arith.constant 0 : i32
    %2 = arith.cmpi ne, %1, %c0_i32_0 : i32
    scf.if %2 {
      %cst_103 = arith.constant 0.000000e+00 : f32
      %357 = vector.broadcast %cst_103 : f32 to vector<8x128xf32>
      %c0_104 = arith.constant 0 : index
      %c0_105 = arith.constant 0 : index
      %358 = vector.load %arg10[%c0_104, %c0_105] : memref<8x128xf32, #tpu.memory_space<vmem>>, vector<8x128xf32>
      tpu.vector_store %arg10[%c0_104, %c0_105], %357 {strides = array<i32>} : memref<8x128xf32, #tpu.memory_space<vmem>>, vector<8x128xf32>,
    } else {
    }
    %c0 = arith.constant 0 : index
    %c0_1 = arith.constant 0 : index
    %3 = vector.load %arg2[%c0, %c0_1] : memref<64x128xbf16, #tpu.memory_space<vmem>>, vector<64x128xbf16>
    %c0_2 = arith.constant 0 : index
    %c0_3 = arith.constant 0 : index
    %c0_4 = arith.constant 0 : index
    %4 = vector.load %arg3[%c0_2, %c0_3, %c0_4] : memref<1x128x384xbf16, #tpu.memory_space<vmem>>, vector<1x128x384xbf16>
    %5 = vector.shape_cast %4 : vector<1x128x384xbf16> to vector<128x384xbf16>
    %cst = arith.constant dense<0.000000e+00> : vector<64x384xf32>
    %6 = tpu.matmul %3, %5, %cst {dimension_numbers = #tpu.dot_dimension_numbers<[1], [0], [0], [1], [0, 0, 1, 1], [], []>} : vector<64x128xbf16>, vector<128x384xbf16>, vector<64x384xf32> -> vector<64x384xf32>
    %c0_5 = arith.constant 0 : index
    %c0_6 = arith.constant 0 : index
    %c0_7 = arith.constant 0 : index
    %7 = vector.load %arg5[%c0_5, %c0_6, %c0_7] : memref<1x1x384xf32, #tpu.memory_space<vmem>>, vector<1x1x384xf32>
    %8 = vector.shape_cast %7 : vector<1x1x384xf32> to vector<1x384xf32>
    %9 = vector.broadcast %8 : vector<1x384xf32> to vector<64x384xf32>
    %10 = arith.addf %6, %9 : vector<64x384xf32>
    %c0_8 = arith.constant 0 : index
    %c0_9 = arith.constant 0 : index
    %11 = vector.load %arg9[%c0_8, %c0_9] : memref<64x384xf32, #tpu.memory_space<vmem>>, vector<64x384xf32>
    tpu.vector_store %arg9[%c0_8, %c0_9], %10 {strides = array<i32>} : memref<64x384xf32, #tpu.memory_space<vmem>>, vector<64x384xf32>,
    %c0_10 = arith.constant 0 : index
    %c0_11 = arith.constant 0 : index
    %c0_12 = arith.constant 0 : index
    %12 = vector.load %arg4[%c0_10, %c0_11, %c0_12] : memref<1x128x384xbf16, #tpu.memory_space<vmem>>, vector<1x128x384xbf16>
    %13 = vector.shape_cast %12 : vector<1x128x384xbf16> to vector<128x384xbf16>
    %c0_13 = arith.constant 0 : index
    %c0_14 = arith.constant 0 : index
    %c0_15 = arith.constant 0 : index
    %14 = vector.load %arg6[%c0_13, %c0_14, %c0_15] : memref<1x1x128xf32, #tpu.memory_space<vmem>>, vector<1x1x128xf32>
    %15 = vector.shape_cast %14 : vector<1x1x128xf32> to vector<1x128xf32>
    %c0_16 = arith.constant 0 : index
    %c0_17 = arith.constant 0 : index
    %16 = vector.load %arg10[%c0_16, %c0_17] : memref<8x128xf32, #tpu.memory_space<vmem>>, vector<8x128xf32>
    %c0_i32_18 = arith.constant 0 : i32
    %c2_i32 = arith.constant 2 : i32
    %17 = arith.muli %c2_i32, %c0_i32_18 : i32
    %c7_i32 = arith.constant 7 : i32
    %18 = arith.subi %c7_i32, %17 : i32
    %19 = arith.muli %arg0, %18 : i32
    %20 = arith.addi %c0_i32_18, %19 : i32
    %c8_i32 = arith.constant 8 : i32
    %21 = arith.muli %20, %c8_i32 : i32
    %22 = tpu.assume_multiple %21, 8 : i32
    %23 = arith.index_cast %22 : i32 to index
    %c0_19 = arith.constant 0 : index
    %24 = vector.load %arg9[%23, %c0_19] : memref<64x384xf32, #tpu.memory_space<vmem>>, vector<8x384xf32>
    %25 = arith.truncf %16 : vector<8x128xf32> to vector<8x128xbf16>
    %cst_20 = arith.constant dense<0.000000e+00> : vector<8x384xf32>
    %26 = tpu.matmul %25, %13, %cst_20 {dimension_numbers = #tpu.dot_dimension_numbers<[1], [0], [0], [1], [0, 0, 1, 1], [], []>} : vector<8x128xbf16>, vector<128x384xbf16>, vector<8x384xf32> -> vector<8x384xf32>
    %27 = vector.extract_strided_slice %24 {offsets = [0, 0], sizes = [8, 128], strides = [1, 1]} : vector<8x384xf32> to vector<8x128xf32>
    %28 = vector.extract_strided_slice %26 {offsets = [0, 0], sizes = [8, 128], strides = [1, 1]} : vector<8x384xf32> to vector<8x128xf32>
    %29 = arith.addf %27, %28 : vector<8x128xf32>
    %30 = arith.negf %29 : vector<8x128xf32>
    %31 = math.exp %30 : vector<8x128xf32>
    %cst_21 = arith.constant 1.000000e+00 : f32
    %32 = vector.broadcast %cst_21 : f32 to vector<8x128xf32>
    %33 = arith.addf %32, %31 : vector<8x128xf32>
    %34 = arith.divf %32, %33 : vector<8x128xf32>
    %35 = vector.extract_strided_slice %24 {offsets = [0, 128], sizes = [8, 128], strides = [1, 1]} : vector<8x384xf32> to vector<8x128xf32>
    %36 = vector.extract_strided_slice %26 {offsets = [0, 128], sizes = [8, 128], strides = [1, 1]} : vector<8x384xf32> to vector<8x128xf32>
    %37 = arith.addf %35, %36 : vector<8x128xf32>
    %38 = arith.negf %37 : vector<8x128xf32>
    %39 = math.exp %38 : vector<8x128xf32>
    %cst_22 = arith.constant 1.000000e+00 : f32
    %40 = vector.broadcast %cst_22 : f32 to vector<8x128xf32>
    %41 = arith.addf %40, %39 : vector<8x128xf32>
    %42 = arith.divf %40, %41 : vector<8x128xf32>
    %43 = vector.extract_strided_slice %24 {offsets = [0, 256], sizes = [8, 128], strides = [1, 1]} : vector<8x384xf32> to vector<8x128xf32>
    %44 = vector.extract_strided_slice %26 {offsets = [0, 256], sizes = [8, 128], strides = [1, 1]} : vector<8x384xf32> to vector<8x128xf32>
    %45 = vector.broadcast %15 : vector<1x128xf32> to vector<8x128xf32>
    %46 = arith.addf %44, %45 : vector<8x128xf32>
    %47 = arith.mulf %34, %46 : vector<8x128xf32>
    %48 = arith.addf %43, %47 : vector<8x128xf32>
    %49 = math.tanh %48 : vector<8x128xf32>
    %cst_23 = arith.constant 1.000000e+00 : f32
    %50 = vector.broadcast %cst_23 : f32 to vector<8x128xf32>
    %51 = arith.subf %50, %42 : vector<8x128xf32>
    %52 = arith.mulf %51, %49 : vector<8x128xf32>
    %53 = arith.mulf %42, %16 : vector<8x128xf32>
    %54 = arith.addf %52, %53 : vector<8x128xf32>
    %55 = arith.index_cast %20 : i32 to index
    %c0_24 = arith.constant 0 : index
    %c0_25 = arith.constant 0 : index
    %56 = vector.load %arg7[%55, %c0_24, %c0_25] : memref<8x8x128xf32, #tpu.memory_space<vmem>>, vector<1x8x128xf32>
    %57 = vector.shape_cast %56 : vector<1x8x128xf32> to vector<8x128xf32>
    %58 = vector.shape_cast %54 : vector<8x128xf32> to vector<1x8x128xf32>
    tpu.vector_store %arg7[%55, %c0_24, %c0_25], %58 {strides = array<i32>} : memref<8x8x128xf32, #tpu.memory_space<vmem>>, vector<1x8x128xf32>,
    %c1_i32 = arith.constant 1 : i32
    %c2_i32_26 = arith.constant 2 : i32
    %59 = arith.muli %c2_i32_26, %c1_i32 : i32
    %c7_i32_27 = arith.constant 7 : i32
    %60 = arith.subi %c7_i32_27, %59 : i32
    %61 = arith.muli %arg0, %60 : i32
    %62 = arith.addi %c1_i32, %61 : i32
    %c8_i32_28 = arith.constant 8 : i32
    %63 = arith.muli %62, %c8_i32_28 : i32
    %64 = tpu.assume_multiple %63, 8 : i32
    %65 = arith.index_cast %64 : i32 to index
    %c0_29 = arith.constant 0 : index
    %66 = vector.load %arg9[%65, %c0_29] : memref<64x384xf32, #tpu.memory_space<vmem>>, vector<8x384xf32>
    %67 = arith.truncf %54 : vector<8x128xf32> to vector<8x128xbf16>
    %cst_30 = arith.constant dense<0.000000e+00> : vector<8x384xf32>
    %68 = tpu.matmul %67, %13, %cst_30 {dimension_numbers = #tpu.dot_dimension_numbers<[1], [0], [0], [1], [0, 0, 1, 1], [], []>} : vector<8x128xbf16>, vector<128x384xbf16>, vector<8x384xf32> -> vector<8x384xf32>
    %69 = vector.extract_strided_slice %66 {offsets = [0, 0], sizes = [8, 128], strides = [1, 1]} : vector<8x384xf32> to vector<8x128xf32>
    %70 = vector.extract_strided_slice %68 {offsets = [0, 0], sizes = [8, 128], strides = [1, 1]} : vector<8x384xf32> to vector<8x128xf32>
    %71 = arith.addf %69, %70 : vector<8x128xf32>
    %72 = arith.negf %71 : vector<8x128xf32>
    %73 = math.exp %72 : vector<8x128xf32>
    %cst_31 = arith.constant 1.000000e+00 : f32
    %74 = vector.broadcast %cst_31 : f32 to vector<8x128xf32>
    %75 = arith.addf %74, %73 : vector<8x128xf32>
    %76 = arith.divf %74, %75 : vector<8x128xf32>
    %77 = vector.extract_strided_slice %66 {offsets = [0, 128], sizes = [8, 128], strides = [1, 1]} : vector<8x384xf32> to vector<8x128xf32>
    %78 = vector.extract_strided_slice %68 {offsets = [0, 128], sizes = [8, 128], strides = [1, 1]} : vector<8x384xf32> to vector<8x128xf32>
    %79 = arith.addf %77, %78 : vector<8x128xf32>
    %80 = arith.negf %79 : vector<8x128xf32>
    %81 = math.exp %80 : vector<8x128xf32>
    %cst_32 = arith.constant 1.000000e+00 : f32
    %82 = vector.broadcast %cst_32 : f32 to vector<8x128xf32>
    %83 = arith.addf %82, %81 : vector<8x128xf32>
    %84 = arith.divf %82, %83 : vector<8x128xf32>
    %85 = vector.extract_strided_slice %66 {offsets = [0, 256], sizes = [8, 128], strides = [1, 1]} : vector<8x384xf32> to vector<8x128xf32>
    %86 = vector.extract_strided_slice %68 {offsets = [0, 256], sizes = [8, 128], strides = [1, 1]} : vector<8x384xf32> to vector<8x128xf32>
    %87 = vector.broadcast %15 : vector<1x128xf32> to vector<8x128xf32>
    %88 = arith.addf %86, %87 : vector<8x128xf32>
    %89 = arith.mulf %76, %88 : vector<8x128xf32>
    %90 = arith.addf %85, %89 : vector<8x128xf32>
    %91 = math.tanh %90 : vector<8x128xf32>
    %cst_33 = arith.constant 1.000000e+00 : f32
    %92 = vector.broadcast %cst_33 : f32 to vector<8x128xf32>
    %93 = arith.subf %92, %84 : vector<8x128xf32>
    %94 = arith.mulf %93, %91 : vector<8x128xf32>
    %95 = arith.mulf %84, %54 : vector<8x128xf32>
    %96 = arith.addf %94, %95 : vector<8x128xf32>
    %97 = arith.index_cast %62 : i32 to index
    %c0_34 = arith.constant 0 : index
    %c0_35 = arith.constant 0 : index
    %98 = vector.load %arg7[%97, %c0_34, %c0_35] : memref<8x8x128xf32, #tpu.memory_space<vmem>>, vector<1x8x128xf32>
    %99 = vector.shape_cast %98 : vector<1x8x128xf32> to vector<8x128xf32>
    %100 = vector.shape_cast %96 : vector<8x128xf32> to vector<1x8x128xf32>
    tpu.vector_store %arg7[%97, %c0_34, %c0_35], %100 {strides = array<i32>} : memref<8x8x128xf32, #tpu.memory_space<vmem>>, vector<1x8x128xf32>,
    %c2_i32_36 = arith.constant 2 : i32
    %c2_i32_37 = arith.constant 2 : i32
    %101 = arith.muli %c2_i32_37, %c2_i32_36 : i32
    %c7_i32_38 = arith.constant 7 : i32
    %102 = arith.subi %c7_i32_38, %101 : i32
    %103 = arith.muli %arg0, %102 : i32
    %104 = arith.addi %c2_i32_36, %103 : i32
    %c8_i32_39 = arith.constant 8 : i32
    %105 = arith.muli %104, %c8_i32_39 : i32
    %106 = tpu.assume_multiple %105, 8 : i32
    %107 = arith.index_cast %106 : i32 to index
    %c0_40 = arith.constant 0 : index
    %108 = vector.load %arg9[%107, %c0_40] : memref<64x384xf32, #tpu.memory_space<vmem>>, vector<8x384xf32>
    %109 = arith.truncf %96 : vector<8x128xf32> to vector<8x128xbf16>
    %cst_41 = arith.constant dense<0.000000e+00> : vector<8x384xf32>
    %110 = tpu.matmul %109, %13, %cst_41 {dimension_numbers = #tpu.dot_dimension_numbers<[1], [0], [0], [1], [0, 0, 1, 1], [], []>} : vector<8x128xbf16>, vector<128x384xbf16>, vector<8x384xf32> -> vector<8x384xf32>
    %111 = vector.extract_strided_slice %108 {offsets = [0, 0], sizes = [8, 128], strides = [1, 1]} : vector<8x384xf32> to vector<8x128xf32>
    %112 = vector.extract_strided_slice %110 {offsets = [0, 0], sizes = [8, 128], strides = [1, 1]} : vector<8x384xf32> to vector<8x128xf32>
    %113 = arith.addf %111, %112 : vector<8x128xf32>
    %114 = arith.negf %113 : vector<8x128xf32>
    %115 = math.exp %114 : vector<8x128xf32>
    %cst_42 = arith.constant 1.000000e+00 : f32
    %116 = vector.broadcast %cst_42 : f32 to vector<8x128xf32>
    %117 = arith.addf %116, %115 : vector<8x128xf32>
    %118 = arith.divf %116, %117 : vector<8x128xf32>
    %119 = vector.extract_strided_slice %108 {offsets = [0, 128], sizes = [8, 128], strides = [1, 1]} : vector<8x384xf32> to vector<8x128xf32>
    %120 = vector.extract_strided_slice %110 {offsets = [0, 128], sizes = [8, 128], strides = [1, 1]} : vector<8x384xf32> to vector<8x128xf32>
    %121 = arith.addf %119, %120 : vector<8x128xf32>
    %122 = arith.negf %121 : vector<8x128xf32>
    %123 = math.exp %122 : vector<8x128xf32>
    %cst_43 = arith.constant 1.000000e+00 : f32
    %124 = vector.broadcast %cst_43 : f32 to vector<8x128xf32>
    %125 = arith.addf %124, %123 : vector<8x128xf32>
    %126 = arith.divf %124, %125 : vector<8x128xf32>
    %127 = vector.extract_strided_slice %108 {offsets = [0, 256], sizes = [8, 128], strides = [1, 1]} : vector<8x384xf32> to vector<8x128xf32>
    %128 = vector.extract_strided_slice %110 {offsets = [0, 256], sizes = [8, 128], strides = [1, 1]} : vector<8x384xf32> to vector<8x128xf32>
    %129 = vector.broadcast %15 : vector<1x128xf32> to vector<8x128xf32>
    %130 = arith.addf %128, %129 : vector<8x128xf32>
    %131 = arith.mulf %118, %130 : vector<8x128xf32>
    %132 = arith.addf %127, %131 : vector<8x128xf32>
    %133 = math.tanh %132 : vector<8x128xf32>
    %cst_44 = arith.constant 1.000000e+00 : f32
    %134 = vector.broadcast %cst_44 : f32 to vector<8x128xf32>
    %135 = arith.subf %134, %126 : vector<8x128xf32>
    %136 = arith.mulf %135, %133 : vector<8x128xf32>
    %137 = arith.mulf %126, %96 : vector<8x128xf32>
    %138 = arith.addf %136, %137 : vector<8x128xf32>
    %139 = arith.index_cast %104 : i32 to index
    %c0_45 = arith.constant 0 : index
    %c0_46 = arith.constant 0 : index
    %140 = vector.load %arg7[%139, %c0_45, %c0_46] : memref<8x8x128xf32, #tpu.memory_space<vmem>>, vector<1x8x128xf32>
    %141 = vector.shape_cast %140 : vector<1x8x128xf32> to vector<8x128xf32>
    %142 = vector.shape_cast %138 : vector<8x128xf32> to vector<1x8x128xf32>
    tpu.vector_store %arg7[%139, %c0_45, %c0_46], %142 {strides = array<i32>} : memref<8x8x128xf32, #tpu.memory_space<vmem>>, vector<1x8x128xf32>,
    %c3_i32 = arith.constant 3 : i32
    %c2_i32_47 = arith.constant 2 : i32
    %143 = arith.muli %c2_i32_47, %c3_i32 : i32
    %c7_i32_48 = arith.constant 7 : i32
    %144 = arith.subi %c7_i32_48, %143 : i32
    %145 = arith.muli %arg0, %144 : i32
    %146 = arith.addi %c3_i32, %145 : i32
    %c8_i32_49 = arith.constant 8 : i32
    %147 = arith.muli %146, %c8_i32_49 : i32
    %148 = tpu.assume_multiple %147, 8 : i32
    %149 = arith.index_cast %148 : i32 to index
    %c0_50 = arith.constant 0 : index
    %150 = vector.load %arg9[%149, %c0_50] : memref<64x384xf32, #tpu.memory_space<vmem>>, vector<8x384xf32>
    %151 = arith.truncf %138 : vector<8x128xf32> to vector<8x128xbf16>
    %cst_51 = arith.constant dense<0.000000e+00> : vector<8x384xf32>
    %152 = tpu.matmul %151, %13, %cst_51 {dimension_numbers = #tpu.dot_dimension_numbers<[1], [0], [0], [1], [0, 0, 1, 1], [], []>} : vector<8x128xbf16>, vector<128x384xbf16>, vector<8x384xf32> -> vector<8x384xf32>
    %153 = vector.extract_strided_slice %150 {offsets = [0, 0], sizes = [8, 128], strides = [1, 1]} : vector<8x384xf32> to vector<8x128xf32>
    %154 = vector.extract_strided_slice %152 {offsets = [0, 0], sizes = [8, 128], strides = [1, 1]} : vector<8x384xf32> to vector<8x128xf32>
    %155 = arith.addf %153, %154 : vector<8x128xf32>
    %156 = arith.negf %155 : vector<8x128xf32>
    %157 = math.exp %156 : vector<8x128xf32>
    %cst_52 = arith.constant 1.000000e+00 : f32
    %158 = vector.broadcast %cst_52 : f32 to vector<8x128xf32>
    %159 = arith.addf %158, %157 : vector<8x128xf32>
    %160 = arith.divf %158, %159 : vector<8x128xf32>
    %161 = vector.extract_strided_slice %150 {offsets = [0, 128], sizes = [8, 128], strides = [1, 1]} : vector<8x384xf32> to vector<8x128xf32>
    %162 = vector.extract_strided_slice %152 {offsets = [0, 128], sizes = [8, 128], strides = [1, 1]} : vector<8x384xf32> to vector<8x128xf32>
    %163 = arith.addf %161, %162 : vector<8x128xf32>
    %164 = arith.negf %163 : vector<8x128xf32>
    %165 = math.exp %164 : vector<8x128xf32>
    %cst_53 = arith.constant 1.000000e+00 : f32
    %166 = vector.broadcast %cst_53 : f32 to vector<8x128xf32>
    %167 = arith.addf %166, %165 : vector<8x128xf32>
    %168 = arith.divf %166, %167 : vector<8x128xf32>
    %169 = vector.extract_strided_slice %150 {offsets = [0, 256], sizes = [8, 128], strides = [1, 1]} : vector<8x384xf32> to vector<8x128xf32>
    %170 = vector.extract_strided_slice %152 {offsets = [0, 256], sizes = [8, 128], strides = [1, 1]} : vector<8x384xf32> to vector<8x128xf32>
    %171 = vector.broadcast %15 : vector<1x128xf32> to vector<8x128xf32>
    %172 = arith.addf %170, %171 : vector<8x128xf32>
    %173 = arith.mulf %160, %172 : vector<8x128xf32>
    %174 = arith.addf %169, %173 : vector<8x128xf32>
    %175 = math.tanh %174 : vector<8x128xf32>
    %cst_54 = arith.constant 1.000000e+00 : f32
    %176 = vector.broadcast %cst_54 : f32 to vector<8x128xf32>
    %177 = arith.subf %176, %168 : vector<8x128xf32>
    %178 = arith.mulf %177, %175 : vector<8x128xf32>
    %179 = arith.mulf %168, %138 : vector<8x128xf32>
    %180 = arith.addf %178, %179 : vector<8x128xf32>
    %181 = arith.index_cast %146 : i32 to index
    %c0_55 = arith.constant 0 : index
    %c0_56 = arith.constant 0 : index
    %182 = vector.load %arg7[%181, %c0_55, %c0_56] : memref<8x8x128xf32, #tpu.memory_space<vmem>>, vector<1x8x128xf32>
    %183 = vector.shape_cast %182 : vector<1x8x128xf32> to vector<8x128xf32>
    %184 = vector.shape_cast %180 : vector<8x128xf32> to vector<1x8x128xf32>
    tpu.vector_store %arg7[%181, %c0_55, %c0_56], %184 {strides = array<i32>} : memref<8x8x128xf32, #tpu.memory_space<vmem>>, vector<1x8x128xf32>,
    %c4_i32 = arith.constant 4 : i32
    %c2_i32_57 = arith.constant 2 : i32
    %185 = arith.muli %c2_i32_57, %c4_i32 : i32
    %c7_i32_58 = arith.constant 7 : i32
    %186 = arith.subi %c7_i32_58, %185 : i32
    %187 = arith.muli %arg0, %186 : i32
    %188 = arith.addi %c4_i32, %187 : i32
    %c8_i32_59 = arith.constant 8 : i32
    %189 = arith.muli %188, %c8_i32_59 : i32
    %190 = tpu.assume_multiple %189, 8 : i32
    %191 = arith.index_cast %190 : i32 to index
    %c0_60 = arith.constant 0 : index
    %192 = vector.load %arg9[%191, %c0_60] : memref<64x384xf32, #tpu.memory_space<vmem>>, vector<8x384xf32>
    %193 = arith.truncf %180 : vector<8x128xf32> to vector<8x128xbf16>
    %cst_61 = arith.constant dense<0.000000e+00> : vector<8x384xf32>
    %194 = tpu.matmul %193, %13, %cst_61 {dimension_numbers = #tpu.dot_dimension_numbers<[1], [0], [0], [1], [0, 0, 1, 1], [], []>} : vector<8x128xbf16>, vector<128x384xbf16>, vector<8x384xf32> -> vector<8x384xf32>
    %195 = vector.extract_strided_slice %192 {offsets = [0, 0], sizes = [8, 128], strides = [1, 1]} : vector<8x384xf32> to vector<8x128xf32>
    %196 = vector.extract_strided_slice %194 {offsets = [0, 0], sizes = [8, 128], strides = [1, 1]} : vector<8x384xf32> to vector<8x128xf32>
    %197 = arith.addf %195, %196 : vector<8x128xf32>
    %198 = arith.negf %197 : vector<8x128xf32>
    %199 = math.exp %198 : vector<8x128xf32>
    %cst_62 = arith.constant 1.000000e+00 : f32
    %200 = vector.broadcast %cst_62 : f32 to vector<8x128xf32>
    %201 = arith.addf %200, %199 : vector<8x128xf32>
    %202 = arith.divf %200, %201 : vector<8x128xf32>
    %203 = vector.extract_strided_slice %192 {offsets = [0, 128], sizes = [8, 128], strides = [1, 1]} : vector<8x384xf32> to vector<8x128xf32>
    %204 = vector.extract_strided_slice %194 {offsets = [0, 128], sizes = [8, 128], strides = [1, 1]} : vector<8x384xf32> to vector<8x128xf32>
    %205 = arith.addf %203, %204 : vector<8x128xf32>
    %206 = arith.negf %205 : vector<8x128xf32>
    %207 = math.exp %206 : vector<8x128xf32>
    %cst_63 = arith.constant 1.000000e+00 : f32
    %208 = vector.broadcast %cst_63 : f32 to vector<8x128xf32>
    %209 = arith.addf %208, %207 : vector<8x128xf32>
    %210 = arith.divf %208, %209 : vector<8x128xf32>
    %211 = vector.extract_strided_slice %192 {offsets = [0, 256], sizes = [8, 128], strides = [1, 1]} : vector<8x384xf32> to vector<8x128xf32>
    %212 = vector.extract_strided_slice %194 {offsets = [0, 256], sizes = [8, 128], strides = [1, 1]} : vector<8x384xf32> to vector<8x128xf32>
    %213 = vector.broadcast %15 : vector<1x128xf32> to vector<8x128xf32>
    %214 = arith.addf %212, %213 : vector<8x128xf32>
    %215 = arith.mulf %202, %214 : vector<8x128xf32>
    %216 = arith.addf %211, %215 : vector<8x128xf32>
    %217 = math.tanh %216 : vector<8x128xf32>
    %cst_64 = arith.constant 1.000000e+00 : f32
    %218 = vector.broadcast %cst_64 : f32 to vector<8x128xf32>
    %219 = arith.subf %218, %210 : vector<8x128xf32>
    %220 = arith.mulf %219, %217 : vector<8x128xf32>
    %221 = arith.mulf %210, %180 : vector<8x128xf32>
    %222 = arith.addf %220, %221 : vector<8x128xf32>
    %223 = arith.index_cast %188 : i32 to index
    %c0_65 = arith.constant 0 : index
    %c0_66 = arith.constant 0 : index
    %224 = vector.load %arg7[%223, %c0_65, %c0_66] : memref<8x8x128xf32, #tpu.memory_space<vmem>>, vector<1x8x128xf32>
    %225 = vector.shape_cast %224 : vector<1x8x128xf32> to vector<8x128xf32>
    %226 = vector.shape_cast %222 : vector<8x128xf32> to vector<1x8x128xf32>
    tpu.vector_store %arg7[%223, %c0_65, %c0_66], %226 {strides = array<i32>} : memref<8x8x128xf32, #tpu.memory_space<vmem>>, vector<1x8x128xf32>,
    %c5_i32 = arith.constant 5 : i32
    %c2_i32_67 = arith.constant 2 : i32
    %227 = arith.muli %c2_i32_67, %c5_i32 : i32
    %c7_i32_68 = arith.constant 7 : i32
    %228 = arith.subi %c7_i32_68, %227 : i32
    %229 = arith.muli %arg0, %228 : i32
    %230 = arith.addi %c5_i32, %229 : i32
    %c8_i32_69 = arith.constant 8 : i32
    %231 = arith.muli %230, %c8_i32_69 : i32
    %232 = tpu.assume_multiple %231, 8 : i32
    %233 = arith.index_cast %232 : i32 to index
    %c0_70 = arith.constant 0 : index
    %234 = vector.load %arg9[%233, %c0_70] : memref<64x384xf32, #tpu.memory_space<vmem>>, vector<8x384xf32>
    %235 = arith.truncf %222 : vector<8x128xf32> to vector<8x128xbf16>
    %cst_71 = arith.constant dense<0.000000e+00> : vector<8x384xf32>
    %236 = tpu.matmul %235, %13, %cst_71 {dimension_numbers = #tpu.dot_dimension_numbers<[1], [0], [0], [1], [0, 0, 1, 1], [], []>} : vector<8x128xbf16>, vector<128x384xbf16>, vector<8x384xf32> -> vector<8x384xf32>
    %237 = vector.extract_strided_slice %234 {offsets = [0, 0], sizes = [8, 128], strides = [1, 1]} : vector<8x384xf32> to vector<8x128xf32>
    %238 = vector.extract_strided_slice %236 {offsets = [0, 0], sizes = [8, 128], strides = [1, 1]} : vector<8x384xf32> to vector<8x128xf32>
    %239 = arith.addf %237, %238 : vector<8x128xf32>
    %240 = arith.negf %239 : vector<8x128xf32>
    %241 = math.exp %240 : vector<8x128xf32>
    %cst_72 = arith.constant 1.000000e+00 : f32
    %242 = vector.broadcast %cst_72 : f32 to vector<8x128xf32>
    %243 = arith.addf %242, %241 : vector<8x128xf32>
    %244 = arith.divf %242, %243 : vector<8x128xf32>
    %245 = vector.extract_strided_slice %234 {offsets = [0, 128], sizes = [8, 128], strides = [1, 1]} : vector<8x384xf32> to vector<8x128xf32>
    %246 = vector.extract_strided_slice %236 {offsets = [0, 128], sizes = [8, 128], strides = [1, 1]} : vector<8x384xf32> to vector<8x128xf32>
    %247 = arith.addf %245, %246 : vector<8x128xf32>
    %248 = arith.negf %247 : vector<8x128xf32>
    %249 = math.exp %248 : vector<8x128xf32>
    %cst_73 = arith.constant 1.000000e+00 : f32
    %250 = vector.broadcast %cst_73 : f32 to vector<8x128xf32>
    %251 = arith.addf %250, %249 : vector<8x128xf32>
    %252 = arith.divf %250, %251 : vector<8x128xf32>
    %253 = vector.extract_strided_slice %234 {offsets = [0, 256], sizes = [8, 128], strides = [1, 1]} : vector<8x384xf32> to vector<8x128xf32>
    %254 = vector.extract_strided_slice %236 {offsets = [0, 256], sizes = [8, 128], strides = [1, 1]} : vector<8x384xf32> to vector<8x128xf32>
    %255 = vector.broadcast %15 : vector<1x128xf32> to vector<8x128xf32>
    %256 = arith.addf %254, %255 : vector<8x128xf32>
    %257 = arith.mulf %244, %256 : vector<8x128xf32>
    %258 = arith.addf %253, %257 : vector<8x128xf32>
    %259 = math.tanh %258 : vector<8x128xf32>
    %cst_74 = arith.constant 1.000000e+00 : f32
    %260 = vector.broadcast %cst_74 : f32 to vector<8x128xf32>
    %261 = arith.subf %260, %252 : vector<8x128xf32>
    %262 = arith.mulf %261, %259 : vector<8x128xf32>
    %263 = arith.mulf %252, %222 : vector<8x128xf32>
    %264 = arith.addf %262, %263 : vector<8x128xf32>
    %265 = arith.index_cast %230 : i32 to index
    %c0_75 = arith.constant 0 : index
    %c0_76 = arith.constant 0 : index
    %266 = vector.load %arg7[%265, %c0_75, %c0_76] : memref<8x8x128xf32, #tpu.memory_space<vmem>>, vector<1x8x128xf32>
    %267 = vector.shape_cast %266 : vector<1x8x128xf32> to vector<8x128xf32>
    %268 = vector.shape_cast %264 : vector<8x128xf32> to vector<1x8x128xf32>
    tpu.vector_store %arg7[%265, %c0_75, %c0_76], %268 {strides = array<i32>} : memref<8x8x128xf32, #tpu.memory_space<vmem>>, vector<1x8x128xf32>,
    %c6_i32 = arith.constant 6 : i32
    %c2_i32_77 = arith.constant 2 : i32
    %269 = arith.muli %c2_i32_77, %c6_i32 : i32
    %c7_i32_78 = arith.constant 7 : i32
    %270 = arith.subi %c7_i32_78, %269 : i32
    %271 = arith.muli %arg0, %270 : i32
    %272 = arith.addi %c6_i32, %271 : i32
    %c8_i32_79 = arith.constant 8 : i32
    %273 = arith.muli %272, %c8_i32_79 : i32
    %274 = tpu.assume_multiple %273, 8 : i32
    %275 = arith.index_cast %274 : i32 to index
    %c0_80 = arith.constant 0 : index
    %276 = vector.load %arg9[%275, %c0_80] : memref<64x384xf32, #tpu.memory_space<vmem>>, vector<8x384xf32>
    %277 = arith.truncf %264 : vector<8x128xf32> to vector<8x128xbf16>
    %cst_81 = arith.constant dense<0.000000e+00> : vector<8x384xf32>
    %278 = tpu.matmul %277, %13, %cst_81 {dimension_numbers = #tpu.dot_dimension_numbers<[1], [0], [0], [1], [0, 0, 1, 1], [], []>} : vector<8x128xbf16>, vector<128x384xbf16>, vector<8x384xf32> -> vector<8x384xf32>
    %279 = vector.extract_strided_slice %276 {offsets = [0, 0], sizes = [8, 128], strides = [1, 1]} : vector<8x384xf32> to vector<8x128xf32>
    %280 = vector.extract_strided_slice %278 {offsets = [0, 0], sizes = [8, 128], strides = [1, 1]} : vector<8x384xf32> to vector<8x128xf32>
    %281 = arith.addf %279, %280 : vector<8x128xf32>
    %282 = arith.negf %281 : vector<8x128xf32>
    %283 = math.exp %282 : vector<8x128xf32>
    %cst_82 = arith.constant 1.000000e+00 : f32
    %284 = vector.broadcast %cst_82 : f32 to vector<8x128xf32>
    %285 = arith.addf %284, %283 : vector<8x128xf32>
    %286 = arith.divf %284, %285 : vector<8x128xf32>
    %287 = vector.extract_strided_slice %276 {offsets = [0, 128], sizes = [8, 128], strides = [1, 1]} : vector<8x384xf32> to vector<8x128xf32>
    %288 = vector.extract_strided_slice %278 {offsets = [0, 128], sizes = [8, 128], strides = [1, 1]} : vector<8x384xf32> to vector<8x128xf32>
    %289 = arith.addf %287, %288 : vector<8x128xf32>
    %290 = arith.negf %289 : vector<8x128xf32>
    %291 = math.exp %290 : vector<8x128xf32>
    %cst_83 = arith.constant 1.000000e+00 : f32
    %292 = vector.broadcast %cst_83 : f32 to vector<8x128xf32>
    %293 = arith.addf %292, %291 : vector<8x128xf32>
    %294 = arith.divf %292, %293 : vector<8x128xf32>
    %295 = vector.extract_strided_slice %276 {offsets = [0, 256], sizes = [8, 128], strides = [1, 1]} : vector<8x384xf32> to vector<8x128xf32>
    %296 = vector.extract_strided_slice %278 {offsets = [0, 256], sizes = [8, 128], strides = [1, 1]} : vector<8x384xf32> to vector<8x128xf32>
    %297 = vector.broadcast %15 : vector<1x128xf32> to vector<8x128xf32>
    %298 = arith.addf %296, %297 : vector<8x128xf32>
    %299 = arith.mulf %286, %298 : vector<8x128xf32>
    %300 = arith.addf %295, %299 : vector<8x128xf32>
    %301 = math.tanh %300 : vector<8x128xf32>
    %cst_84 = arith.constant 1.000000e+00 : f32
    %302 = vector.broadcast %cst_84 : f32 to vector<8x128xf32>
    %303 = arith.subf %302, %294 : vector<8x128xf32>
    %304 = arith.mulf %303, %301 : vector<8x128xf32>
    %305 = arith.mulf %294, %264 : vector<8x128xf32>
    %306 = arith.addf %304, %305 : vector<8x128xf32>
    %307 = arith.index_cast %272 : i32 to index
    %c0_85 = arith.constant 0 : index
    %c0_86 = arith.constant 0 : index
    %308 = vector.load %arg7[%307, %c0_85, %c0_86] : memref<8x8x128xf32, #tpu.memory_space<vmem>>, vector<1x8x128xf32>
    %309 = vector.shape_cast %308 : vector<1x8x128xf32> to vector<8x128xf32>
    %310 = vector.shape_cast %306 : vector<8x128xf32> to vector<1x8x128xf32>
    tpu.vector_store %arg7[%307, %c0_85, %c0_86], %310 {strides = array<i32>} : memref<8x8x128xf32, #tpu.memory_space<vmem>>, vector<1x8x128xf32>,
    %c7_i32_87 = arith.constant 7 : i32
    %c2_i32_88 = arith.constant 2 : i32
    %311 = arith.muli %c2_i32_88, %c7_i32_87 : i32
    %c7_i32_89 = arith.constant 7 : i32
    %312 = arith.subi %c7_i32_89, %311 : i32
    %313 = arith.muli %arg0, %312 : i32
    %314 = arith.addi %c7_i32_87, %313 : i32
    %c8_i32_90 = arith.constant 8 : i32
    %315 = arith.muli %314, %c8_i32_90 : i32
    %316 = tpu.assume_multiple %315, 8 : i32
    %317 = arith.index_cast %316 : i32 to index
    %c0_91 = arith.constant 0 : index
    %318 = vector.load %arg9[%317, %c0_91] : memref<64x384xf32, #tpu.memory_space<vmem>>, vector<8x384xf32>
    %319 = arith.truncf %306 : vector<8x128xf32> to vector<8x128xbf16>
    %cst_92 = arith.constant dense<0.000000e+00> : vector<8x384xf32>
    %320 = tpu.matmul %319, %13, %cst_92 {dimension_numbers = #tpu.dot_dimension_numbers<[1], [0], [0], [1], [0, 0, 1, 1], [], []>} : vector<8x128xbf16>, vector<128x384xbf16>, vector<8x384xf32> -> vector<8x384xf32>
    %321 = vector.extract_strided_slice %318 {offsets = [0, 0], sizes = [8, 128], strides = [1, 1]} : vector<8x384xf32> to vector<8x128xf32>
    %322 = vector.extract_strided_slice %320 {offsets = [0, 0], sizes = [8, 128], strides = [1, 1]} : vector<8x384xf32> to vector<8x128xf32>
    %323 = arith.addf %321, %322 : vector<8x128xf32>
    %324 = arith.negf %323 : vector<8x128xf32>
    %325 = math.exp %324 : vector<8x128xf32>
    %cst_93 = arith.constant 1.000000e+00 : f32
    %326 = vector.broadcast %cst_93 : f32 to vector<8x128xf32>
    %327 = arith.addf %326, %325 : vector<8x128xf32>
    %328 = arith.divf %326, %327 : vector<8x128xf32>
    %329 = vector.extract_strided_slice %318 {offsets = [0, 128], sizes = [8, 128], strides = [1, 1]} : vector<8x384xf32> to vector<8x128xf32>
    %330 = vector.extract_strided_slice %320 {offsets = [0, 128], sizes = [8, 128], strides = [1, 1]} : vector<8x384xf32> to vector<8x128xf32>
    %331 = arith.addf %329, %330 : vector<8x128xf32>
    %332 = arith.negf %331 : vector<8x128xf32>
    %333 = math.exp %332 : vector<8x128xf32>
    %cst_94 = arith.constant 1.000000e+00 : f32
    %334 = vector.broadcast %cst_94 : f32 to vector<8x128xf32>
    %335 = arith.addf %334, %333 : vector<8x128xf32>
    %336 = arith.divf %334, %335 : vector<8x128xf32>
    %337 = vector.extract_strided_slice %318 {offsets = [0, 256], sizes = [8, 128], strides = [1, 1]} : vector<8x384xf32> to vector<8x128xf32>
    %338 = vector.extract_strided_slice %320 {offsets = [0, 256], sizes = [8, 128], strides = [1, 1]} : vector<8x384xf32> to vector<8x128xf32>
    %339 = vector.broadcast %15 : vector<1x128xf32> to vector<8x128xf32>
    %340 = arith.addf %338, %339 : vector<8x128xf32>
    %341 = arith.mulf %328, %340 : vector<8x128xf32>
    %342 = arith.addf %337, %341 : vector<8x128xf32>
    %343 = math.tanh %342 : vector<8x128xf32>
    %cst_95 = arith.constant 1.000000e+00 : f32
    %344 = vector.broadcast %cst_95 : f32 to vector<8x128xf32>
    %345 = arith.subf %344, %336 : vector<8x128xf32>
    %346 = arith.mulf %345, %343 : vector<8x128xf32>
    %347 = arith.mulf %336, %306 : vector<8x128xf32>
    %348 = arith.addf %346, %347 : vector<8x128xf32>
    %349 = arith.index_cast %314 : i32 to index
    %c0_96 = arith.constant 0 : index
    %c0_97 = arith.constant 0 : index
    %350 = vector.load %arg7[%349, %c0_96, %c0_97] : memref<8x8x128xf32, #tpu.memory_space<vmem>>, vector<1x8x128xf32>
    %351 = vector.shape_cast %350 : vector<1x8x128xf32> to vector<8x128xf32>
    %352 = vector.shape_cast %348 : vector<8x128xf32> to vector<1x8x128xf32>
    tpu.vector_store %arg7[%349, %c0_96, %c0_97], %352 {strides = array<i32>} : memref<8x8x128xf32, #tpu.memory_space<vmem>>, vector<1x8x128xf32>,
    %c8_i32_98 = arith.constant 8 : i32
    %c0_99 = arith.constant 0 : index
    %c0_100 = arith.constant 0 : index
    %353 = vector.load %arg10[%c0_99, %c0_100] : memref<8x128xf32, #tpu.memory_space<vmem>>, vector<8x128xf32>
    tpu.vector_store %arg10[%c0_99, %c0_100], %348 {strides = array<i32>} : memref<8x128xf32, #tpu.memory_space<vmem>>, vector<8x128xf32>,
    %c0_i32_101 = arith.constant 0 : i32
    %354 = arith.cmpi eq, %arg1, %c0_i32_101 : i32
    %355 = arith.extui %354 : i1 to i32
    %c0_i32_102 = arith.constant 0 : i32
    %356 = arith.cmpi ne, %355, %c0_i32_102 : i32
    scf.if %356 {
      %c0_103 = arith.constant 0 : index
      %c0_104 = arith.constant 0 : index
      %357 = vector.load %arg8[%c0_103, %c0_104] : memref<8x128xf32, #tpu.memory_space<vmem>>, vector<8x128xf32>
      tpu.vector_store %arg8[%c0_103, %c0_104], %348 {strides = array<i32>} : memref<8x128xf32, #tpu.memory_space<vmem>>, vector<8x128xf32>,
    } else {
    }
    return
  }
  func.func @transform_0(%arg0: i32, %arg1: i32) -> (i32, i32) {
    %c2_i32 = arith.constant 2 : i32
    %0 = arith.muli %c2_i32, %arg1 : i32
    %c0_i32 = arith.constant 0 : i32
    %1 = arith.subi %c0_i32, %0 : i32
    %2 = arith.muli %arg0, %1 : i32
    %3 = arith.addi %arg1, %2 : i32
    %c0_i32_0 = arith.constant 0 : i32
    %c0_i32_1 = arith.constant 0 : i32
    return %3, %c0_i32_0 : i32, i32
  }
  func.func @transform_1(%arg0: i32, %arg1: i32) -> (i32, i32, i32) {
    %c0_i32 = arith.constant 0 : i32
    %c0_i32_0 = arith.constant 0 : i32
    %c0_i32_1 = arith.constant 0 : i32
    return %arg0, %c0_i32, %c0_i32_0 : i32, i32, i32
  }
  func.func @transform_2(%arg0: i32, %arg1: i32) -> (i32, i32, i32) {
    %c0_i32 = arith.constant 0 : i32
    %c0_i32_0 = arith.constant 0 : i32
    %c0_i32_1 = arith.constant 0 : i32
    return %arg0, %c0_i32, %c0_i32_0 : i32, i32, i32
  }
  func.func @transform_3(%arg0: i32, %arg1: i32) -> (i32, i32, i32) {
    %c0_i32 = arith.constant 0 : i32
    %c0_i32_0 = arith.constant 0 : i32
    %c0_i32_1 = arith.constant 0 : i32
    return %arg0, %c0_i32, %c0_i32_0 : i32, i32, i32
  }
  func.func @transform_4(%arg0: i32, %arg1: i32) -> (i32, i32, i32) {
    %c0_i32 = arith.constant 0 : i32
    %c0_i32_0 = arith.constant 0 : i32
    %c0_i32_1 = arith.constant 0 : i32
    return %arg0, %c0_i32, %c0_i32_0 : i32, i32, i32
  }
  func.func @transform_5(%arg0: i32, %arg1: i32) -> (i32, i32, i32) {
    %c2_i32 = arith.constant 2 : i32
    %0 = arith.muli %c2_i32, %arg1 : i32
    %c0_i32 = arith.constant 0 : i32
    %1 = arith.subi %c0_i32, %0 : i32
    %2 = arith.muli %arg0, %1 : i32
    %3 = arith.addi %arg1, %2 : i32
    %c0_i32_0 = arith.constant 0 : i32
    %c0_i32_1 = arith.constant 0 : i32
    return %3, %c0_i32_0, %arg0 : i32, i32, i32
  }
  func.func @transform_6(%arg0: i32, %arg1: i32) -> (i32, i32) {
    %c0_i32 = arith.constant 0 : i32
    %c0_i32_0 = arith.constant 0 : i32
    return %c0_i32, %arg0 : i32, i32
  }
}

</mosaic_0001>

<bundles_post_ra>
// kernel: encoder_rnn_forward.1
= control target key start
LH: loop header
LB: loop body
LE: loop exit
PB: predicated region body
PF: predicated region fallthrough
CT: control target
= control target key end

     0   :  { %s3411_s0 = inlined_call_operand.vmem [shape: bf16[64,128], index: 0, kind: input, shape index: {}]   ;;  %s3412_s1 = inlined_call_operand.hbm [shape: bf16[2,128,384], index: 1, kind: input, shape index: {}]   ;;  %s3413_s2 = inlined_call_operand.hbm [shape: bf16[2,128,384], index: 2, kind: input, shape index: {}]   ;;  %s3414_s3 = inlined_call_operand.vmem [shape: f32[2,1,384], index: 3, kind: input, shape index: {}]   ;;  %s3415_s4 = inlined_call_operand.vmem [shape: f32[2,1,128], index: 4, kind: input, shape index: {}]   ;;  %s3416_s5 = inlined_call_operand.vmem [shape: f32[8,8,256], index: 5, kind: output, shape index: {0}]   ;;  %s3417_s6 = inlined_call_operand.hbm [shape: f32[8,256], index: 6, kind: output, shape index: {1}]  }
   0x1   :  { %3420 = sst [smem:[#allocation17_spill]] %s3412_s1 }
   0x2   :  { %12 = vsyncpa [#allocation5], 0 }
   0x3   :  { %14 = vsyncpa [#allocation5 + $0x1], 0 }
   0x4   :  { %15 = vsyncpa [#allocation8], 0 }
   0x5   :  { %17 = vsyncpa [#allocation8 + $0x1], 0 }
   0x6   :  { %18 = vsyncpa [#allocation6], 0 }
   0x7   :  { %20 = vsyncpa [#allocation6 + $0x1], 0  ;;  %s2711_s21 = smov 0   ;;  %s2713_s22 = smov 0  }
   0x8   :  { %s2715_s23 = smov 0   ;;  %s2717_s24 = smov 0  }
   0x9   :  { %s2719_s25 = smov 0   ;;  %s2721_s26 = smov 0  }
   0xa LB: > { %3421 = sst [smem:[#allocation14_spill]] %s2667_s25  ;;  %s2022_s27 = sadd.s32 4294967295, %s2671_s26   ;;  %s2671_s26 = sphi %s2721_s26, %s26_s26   ;;  %s2667_s25 = sphi %s2719_s25, %s3432_s25   ;;  %s2663_s24 = sphi %s2717_s24, %s3431_s24   ;;  %s2659_s23 = sphi %s2715_s23, %s3435_s23   ;;  %s2655_s22 = sphi %s2713_s22, %s3434_s22   ;;  %s2651_s21 = sphi %s2711_s21, %s3433_s21  }
   0xb   : > { %s2023_s28 = sadd.s32 4294967294, %s2671_s26   ;;  %s38_s29 = sadd.s32 1, %s2667_s25 }
   0xc   : > { %s79_s30 = sadd.s32 1, %s2659_s23  ;;  %p40_p0 = scmp.ge.s32.totalorder %s38_s29, 2 }
   0xd   : > { %p86_p1 = scmp.ne.s32.totalorder %s2659_s23, %s2655_s22  ;;  %p87_p2 = scmp.eq.s32.totalorder %s2671_s26, 0 }
   0xe   : > { %p92_p3 = scmp.ne.s32.totalorder %s2655_s22, %s2651_s21  ;;  %s3437_s29 = smov (%p40_p0, %s38_s29), 0 }
   0xf   : > { %3422 = sst [smem:[#allocation15_spill]] %s3437_s29  ;;  %p2752_p4 = por %p87_p2, %p86_p1 }
  0x10   : > { %p93_p5 = scmp.eq.s32.totalorder %s2022_s27, 0  ;;  %s76_s8 = ssub.s32 %s2667_s25, %s3437_s29 }
  0x11   : > { %p204_p6 = scmp.eq.s32.totalorder %s2022_s27, 1  ;;  %p77_p7 = scmp.eq.s32.totalorder %s76_s8, 0 }
  0x12   : > { %p2758_p8 = por %p93_p5, %p92_p3  ;;  %p236_p10 = scmp.eq.s32.totalorder %s2023_s28, 1 }
  0x13   : > { %p2762_p9 = por %p204_p6, %p86_p1  ;;  %p2025_p12 = scmp.ge.s32.totalorder %s2671_s26, 2 }
  0x14   : > { %s2767_s11 = scalar_select %p77_p7, %s2659_s23, %s79_s30  }
  0x15   : > { %p2769_p11 = por %p236_p10, %p92_p3  ;;  %p2390_p13 = scmp.lt.s32.totalorder %s2671_s26, 2 }
  0x16   : > { %3426 = sst [smem:[#allocation16_spill]] %s2767_s11  ;;  %s2776_s13 = sand.u32 1, %s2659_s23  }
  0x17   : > { %s2367_s14 = smul.u32 192, %s2776_s13  ;;  %p2782_p0 = pnand %p2390_p13, %p2752_p4 }
  0x18   : > { %s2368_s15 = smul.u32 192, %s2667_s25  ;;  %s3429_s1 = sld [smem:[#allocation17_spill]] }
  0x19   : > { %s277_s20 = scalar_lea.vmem [#allocation4], %s2367_s14  ;;  %p2029_p1 = scmp.ge.s32.totalorder %s2671_s26, 1 }
  0x1a   : > { %s285_s27 = sshll.u32 %s277_s20, 4  ;;  %s274_s30 = scalar_lea.sflag [#allocation5], %s2776_s13  ;;  %s286_s27 = int_to_ptr.vmem [resolvable:$true] %s285_s27 }
  0x1b   : > { %s2673_s8 = smov 192   ;;  %s2674_s7 = smov 12  }
  0x1c   : > { %p328_p2 = scmp.lt.s32.totalorder %s2671_s26, 3  ;;  %s304_s17 = scalar_lea.hbm %s3413_s2, %s2368_s15 }
  0x1d   : > { %s305_s18 = sshll.u32 %s304_s17, 4  ;;  %s299_s20 = scalar_lea.vmem [#allocation7], %s2367_s14  ;;  %s306_s18 = int_to_ptr.hbm [resolvable:$true] %s305_s18 }
  0x1e   : > { %s282_s19 = scalar_lea.hbm %s3429_s1, %s2368_s15  ;;  %p329_p3 = pnand %p2029_p1, %p328_p2 }
  0x1f   : > { %s283_s28 = sshll.u32 %s282_s19, 4  ;;  %s307_s19 = sshll.u32 %s299_s20, 4  ;;  %s284_s28 = int_to_ptr.hbm [resolvable:$true] %s283_s28  ;;  %s308_s19 = int_to_ptr.vmem [resolvable:$true] %s307_s19 }
  0x20   : > { %2382 = dma.hbm_to_vmem [thread:$0]  (!%p2782_p0), %s284_s28, 3072, %s286_s27, %s274_s30, %s2673_s8, %s2673_s8, %s2674_s7  }
  0x21   : > { %s296_s1 = scalar_lea.sflag [#allocation8], %s2776_s13  ;;  %332 = sbr.rel (%p329_p3) target bundleno = 1581 (0x62d), region = 40 }
  0x22   : > { %2385 = dma.hbm_to_vmem [thread:$0]  (!%p2782_p0), %s306_s18, 3072, %s308_s19, %s296_s1, %s2673_s8, %s2673_s8, %s2674_s7  }
  0x23   : > { %s2801_s11 = sand.u32 (!%p329_p3), 1, %s2655_s22  }
  0x24   : > { %s2371_s27 = smul.u32 (!%p329_p3), 192, %s2801_s11  ;;  %s335_s28 = scalar_lea.sflag (!%p329_p3), [#allocation5], %s2801_s11 }
  0x26   : > { %s2805_s25 = scalar_lea.vmem [#allocation4], %s2371_s27 }
  0x27   : > { %2638 = dma.done.wait (%p2758_p8), %s335_s28, 3072  }
  0x28   : > { %2640 = vsyncadd (%p2758_p8), %s335_s28, 4294964224  ;;  %s345_s29 = scalar_lea.sflag [#allocation8], %s2801_s11  ;;  %s2812_s1 = scalar_lea.vmem [#allocation7], %s2371_s27 }
  0x29   : > { %2642 = dma.done.wait (%p2758_p8), %s345_s29, 3072  }
  0x2a   : > { %2644 = vsyncadd (%p2758_p8), %s345_s29, 4294964224  ;;  %v2134_v0 = vld [vmem:[%s2805_s25 + $0xa8] sm:$0xf]  ;;  %v2316_v1 = vld [vmem:[%s2805_s25 + $0xb0] sm:$0xf0]  ;;  %p417_p4 = scmp.lt.s32.totalorder %s2663_s24, 1 }
  0x2b   : > { %v2315_v2 = vld [vmem:[%s2805_s25 + $0xac] sm:$0xf]  ;;  %v2135_v3 = vor.u32 %v2316_v1, %v2134_v0  ;;  %v2136_v4 = vld [vmem:[%s2805_s25 + $0xb4] sm:$0xf0]  ;;  %v2142_v5 = vld [vmem:[%s2805_s25 + $0xb0] sm:$0xf] }
  0x2c   : > { %v2317_v6 = vld [vmem:[%s2805_s25 + $0xb8] sm:$0xf0]  ;;  %v2139_v7 = vor.u32 %v2315_v2, %v2136_v4  ;;  %v2122_v9 = vld [vmem:[%s2805_s25 + $0x90] sm:$0xf]  ;;  %v2312_v11 = vld [vmem:[%s2805_s25 + $0x94] sm:$0xf] }
  0x2d   : > { %v2143_v8 = vor.u32 %v2317_v6, %v2142_v5  ;;  %v2313_v10 = vld [vmem:[%s2805_s25 + $0x98] sm:$0xf0]  ;;  %634 = vmatpush.bf16.msra.mxu0 %v2135_v3  ;;  %v2124_v13 = vld [vmem:[%s2805_s25 + $0x9c] sm:$0xf0]  ;;  %v2130_v14 = vld [vmem:[%s2805_s25 + $0x98] sm:$0xf] }
  0x2e   : > { %v2123_v12 = vor.u32 %v2313_v10, %v2122_v9  ;;  %v2314_v15 = vld [vmem:[%s2805_s25 + $0xa0] sm:$0xf0]  ;;  %663 = vmatpush.bf16.msra.mxu1 %v2139_v7  ;;  %v2127_v16 = vor.u32 %v2312_v11, %v2124_v13  ;;  %v2110_v18 = vld [vmem:[%s2805_s25 + $0x78] sm:$0xf]  ;;  %v2309_v20 = vld [vmem:[%s2805_s25 + $0x7c] sm:$0xf] }
  0x2f   : > { %692 = vmatpush.bf16.msra.mxu2 %v2143_v8  ;;  %v2131_v17 = vor.u32 %v2314_v15, %v2130_v14  ;;  %v2310_v19 = vld [vmem:[%s2805_s25 + $0x80] sm:$0xf0]  ;;  %v2112_v21 = vld [vmem:[%s2805_s25 + $0x84] sm:$0xf0]  ;;  %v2118_v22 = vld [vmem:[%s2805_s25 + $0x80] sm:$0xf] }
  0x30   : > { %v2311_v23 = vld [vmem:[%s2805_s25 + $0x88] sm:$0xf0]  ;;  %v2111_v24 = vor.u32 %v2310_v19, %v2110_v18  ;;  %v2115_v25 = vor.u32 %v2309_v20, %v2112_v21  ;;  %v2098_v27 = vld [vmem:[%s2805_s25 + $0x60] sm:$0xf]  ;;  %v2306_v29 = vld [vmem:[%s2805_s25 + $0x64] sm:$0xf] }
  0x31   : > { %635 = vmatpush.bf16.msra.mxu0 %v2123_v12  ;;  %v2119_v26 = vor.u32 %v2311_v23, %v2118_v22  ;;  %v2307_v28 = vld [vmem:[%s2805_s25 + $0x68] sm:$0xf0]  ;;  %v2100_v30 = vld [vmem:[%s2805_s25 + $0x6c] sm:$0xf0]  ;;  %v2106_v31 = vld [vmem:[%s2805_s25 + $0x68] sm:$0xf] }
  0x32   : > { %664 = vmatpush.bf16.msra.mxu1 %v2127_v16  ;;  %v2308_v32 = vld [vmem:[%s2805_s25 + $0x70] sm:$0xf0]  ;;  %v2099_v33 = vor.u32 %v2307_v28, %v2098_v27  ;;  %v2103_v34 = vor.u32 %v2306_v29, %v2100_v30  ;;  %v2086_v36 = vld [vmem:[%s2805_s25 + $0x48] sm:$0xf]  ;;  %v2303_v38 = vld [vmem:[%s2805_s25 + $0x4c] sm:$0xf] }
  0x33   : > { %693 = vmatpush.bf16.msra.mxu2 %v2131_v17  ;;  %v2107_v35 = vor.u32 %v2308_v32, %v2106_v31  ;;  %v2304_v37 = vld [vmem:[%s2805_s25 + $0x50] sm:$0xf0]  ;;  %v2088_v39 = vld [vmem:[%s2805_s25 + $0x54] sm:$0xf0]  ;;  %v2094_v40 = vld [vmem:[%s2805_s25 + $0x50] sm:$0xf] }
  0x34   : > { %v2305_v41 = vld [vmem:[%s2805_s25 + $0x58] sm:$0xf0]  ;;  %v2074_v42 = vld [vmem:[%s2805_s25 + $0x30] sm:$0xf]  ;;  %v2087_v43 = vor.u32 %v2304_v37, %v2086_v36  ;;  %v2300_v45 = vld [vmem:[%s2805_s25 + $0x34] sm:$0xf]  ;;  %v2091_v47 = vor.u32 %v2303_v38, %v2088_v39 }
  0x35   : > { %636 = vmatpush.bf16.msra.mxu0 %v2111_v24  ;;  %v2301_v44 = vld [vmem:[%s2805_s25 + $0x38] sm:$0xf0]  ;;  %v2076_v46 = vld [vmem:[%s2805_s25 + $0x3c] sm:$0xf0]  ;;  %v2095_v48 = vor.u32 %v2305_v41, %v2094_v40  ;;  %v2082_v49 = vld [vmem:[%s2805_s25 + $0x38] sm:$0xf] }
  0x36   : > { %665 = vmatpush.bf16.msra.mxu1 %v2115_v25  ;;  %v2231_v50 = vld [vmem:[%s2812_s1 + $0xa8] sm:$0xf]  ;;  %v2340_v51 = vld [vmem:[%s2812_s1 + $0xb0] sm:$0xf0]  ;;  %v2302_v52 = vld [vmem:[%s2805_s25 + $0x40] sm:$0xf0]  ;;  %v2075_v56 = vor.u32 %v2301_v44, %v2074_v42  ;;  %v2079_v60 = vor.u32 %v2300_v45, %v2076_v46 }
  0x37   : > { %694 = vmatpush.bf16.msra.mxu2 %v2119_v26  ;;  %v2856_v53 = vor.u32 %v2340_v51, %v2231_v50  ;;  %v2219_v54 = vld [vmem:[%s2812_s1 + $0x90] sm:$0xf]  ;;  %v2337_v55 = vld [vmem:[%s2812_s1 + $0x98] sm:$0xf0]  ;;  %v2062_v57 = vld [vmem:[%s2805_s25 + $0x18] sm:$0xf]  ;;  %v2083_v61 = vor.u32 %v2302_v52, %v2082_v49 }
  0x38   : > { %v2298_v58 = vld [vmem:[%s2805_s25 + $0x20] sm:$0xf0]  ;;  %v2863_v59 = vor.u32 %v2337_v55, %v2219_v54  ;;  %v2297_v62 = vld [vmem:[%s2805_s25 + $0x1c] sm:$0xf]  ;;  %v2207_v63 = vld [vmem:[%s2812_s1 + $0x78] sm:$0xf] }
  0x39   : > { %637 = vmatpush.bf16.msra.mxu0 %v2099_v33  ;;  %918 = vmatpush.bf16.msra.mxu3 %v2856_v53  ;;  %v2334_v0 = vld [vmem:[%s2812_s1 + $0x80] sm:$0xf0]  ;;  %v2064_v1 = vld [vmem:[%s2805_s25 + $0x24] sm:$0xf0]  ;;  %v2070_v2 = vld [vmem:[%s2805_s25 + $0x20] sm:$0xf]  ;;  %v2063_v4 = vor.u32 %v2298_v58, %v2062_v57 }
  0x3a   : > { %666 = vmatpush.bf16.msra.mxu1 %v2103_v34  ;;  %v2299_v3 = vld [vmem:[%s2805_s25 + $0x28] sm:$0xf0]  ;;  %v2050_v5 = vld [vmem:[%s2805_s25] sm:$0xf]  ;;  %v2874_v7 = vor.u32 %v2334_v0, %v2207_v63  ;;  %v2067_v8 = vor.u32 %v2297_v62, %v2064_v1  ;;  %v2294_v10 = vld [vmem:[%s2805_s25 + $0x4] sm:$0xf] }
  0x3b   : > { %695 = vmatpush.bf16.msra.mxu2 %v2107_v35  ;;  %v2295_v6 = vld [vmem:[%s2805_s25 + $0x8] sm:$0xf0]  ;;  %v2071_v9 = vor.u32 %v2299_v3, %v2070_v2  ;;  %v2195_v11 = vld [vmem:[%s2812_s1 + $0x60] sm:$0xf]  ;;  %v2052_v13 = vld [vmem:[%s2805_s25 + $0xc] sm:$0xf0] }
  0x3c   : > { %v2331_v12 = vld [vmem:[%s2812_s1 + $0x68] sm:$0xf0]  ;;  %v2058_v14 = vld [vmem:[%s2805_s25 + $0x8] sm:$0xf]  ;;  %v2296_v15 = vld [vmem:[%s2805_s25 + $0x10] sm:$0xf0]  ;;  %v2051_v16 = vor.u32 %v2295_v6, %v2050_v5  ;;  %v2055_v18 = vor.u32 %v2294_v10, %v2052_v13 }
  0x3d   : > { %638 = vmatpush.bf16.msra.mxu0 %v2087_v43  ;;  %919 = vmatpush.bf16.msra.mxu3 %v2863_v59  ;;  %v2883_v17 = vor.u32 %v2331_v12, %v2195_v11  ;;  %v2059_v19 = vor.u32 %v2296_v15, %v2058_v14  ;;  %v2183_v20 = vld [vmem:[%s2812_s1 + $0x48] sm:$0xf]  ;;  %v2328_v21 = vld [vmem:[%s2812_s1 + $0x50] sm:$0xf0]  ;;  %v2290_v22 = vld [vmem:[%s3411_s0] sm:$0xff]  ;;  %v2675_v55 = vmov 0.0|0.0  }
  0x3e   : > { %667 = vmatpush.bf16.msra.mxu1 %v2091_v47  ;;  %v2891_v23 = vor.u32 %v2328_v21, %v2183_v20  ;;  %v2171_v24 = vld [vmem:[%s2812_s1 + $0x30] sm:$0xf]  ;;  %v2325_v25 = vld [vmem:[%s2812_s1 + $0x38] sm:$0xf0]  ;;  %v2339_v26 = vld [vmem:[%s2812_s1 + $0xac] sm:$0xf] }
  0x3f   : > { %696 = vmatpush.bf16.msra.mxu2 %v2095_v48  ;;  %v2233_v27 = vld [vmem:[%s2812_s1 + $0xb4] sm:$0xf0]  ;;  %v2239_v28 = vld [vmem:[%s2812_s1 + $0xb0] sm:$0xf]  ;;  %v2900_v29 = vor.u32 %v2325_v25, %v2171_v24  ;;  %v2322_v31 = vld [vmem:[%s2812_s1 + $0x20] sm:$0xf0] }
  0x40   : > { %v2159_v30 = vld [vmem:[%s2812_s1 + $0x18] sm:$0xf]  ;;  %v2904_v32 = vor.u32 %v2339_v26, %v2233_v27  ;;  %v2341_v33 = vld [vmem:[%s2812_s1 + $0xb8] sm:$0xf0]  ;;  %v2336_v35 = vld [vmem:[%s2812_s1 + $0x94] sm:$0xf] }
  0x41   : > { %639 = vmatpush.bf16.msra.mxu0 %v2075_v56  ;;  %920 = vmatpush.bf16.msra.mxu3 %v2874_v7  ;;  %v2907_v34 = vor.u32 %v2341_v33, %v2239_v28  ;;  %v2221_v36 = vld [vmem:[%s2812_s1 + $0x9c] sm:$0xf0]  ;;  %v2227_v37 = vld [vmem:[%s2812_s1 + $0x98] sm:$0xf]  ;;  %v2338_v38 = vld [vmem:[%s2812_s1 + $0xa0] sm:$0xf0]  ;;  %v2919_v40 = vor.u32 %v2322_v31, %v2159_v30 }
  0x42   : > { %668 = vmatpush.bf16.msra.mxu1 %v2079_v60  ;;  %v2916_v39 = vor.u32 %v2338_v38, %v2227_v37  ;;  %v2147_v41 = vld [vmem:[%s2812_s1] sm:$0xf]  ;;  %v2922_v42 = vor.u32 %v2336_v35, %v2221_v36  ;;  %v2319_v43 = vld [vmem:[%s2812_s1 + $0x8] sm:$0xf0]  ;;  %v2333_v44 = vld [vmem:[%s2812_s1 + $0x7c] sm:$0xf] }
  0x43   : > { %697 = vmatpush.bf16.msra.mxu2 %v2083_v61  ;;  %v2209_v45 = vld [vmem:[%s2812_s1 + $0x84] sm:$0xf0]  ;;  %v2931_v46 = vor.u32 %v2319_v43, %v2147_v41  ;;  %v2330_v48 = vld [vmem:[%s2812_s1 + $0x64] sm:$0xf]  ;;  %v2197_v49 = vld [vmem:[%s2812_s1 + $0x6c] sm:$0xf0] }
  0x44   : > { %v2933_v47 = vor.u32 %v2333_v44, %v2209_v45  ;;  %v2291_v50 = vld [vmem:[%s3411_s0 + $0x8] sm:$0xff]  ;;  %v2943_v51 = vor.u32 %v2330_v48, %v2197_v49  ;;  %v2185_v54 = vld [vmem:[%s2812_s1 + $0x54] sm:$0xf0]  ;;  %v2215_v57 = vld [vmem:[%s2812_s1 + $0x80] sm:$0xf]  ;;  %s418_s17 = scalar_select %p417_p4, %s2663_s24, 1 }
  0x45   : > { %640 = vmatpush.bf16.msra.mxu0 %v2063_v4  ;;  %921 = vmatpush.bf16.msra.mxu3 %v2883_v17  ;;  %v2327_v52 = vld [vmem:[%s2812_s1 + $0x4c] sm:$0xf]  ;;  %v2324_v61 = vld [vmem:[%s2812_s1 + $0x34] sm:$0xf]  ;;  %v2173_v62 = vld [vmem:[%s2812_s1 + $0x3c] sm:$0xf0] }
  0x46   : > { %669 = vmatpush.bf16.msra.mxu1 %v2067_v8  ;;  %v2951_v56 = vor.u32 %v2327_v52, %v2185_v54  ;;  %v2335_v58 = vld [vmem:[%s2812_s1 + $0x88] sm:$0xf0]  ;;  %v2203_v63 = vld [vmem:[%s2812_s1 + $0x68] sm:$0xf]  ;;  %v2332_v0 = vld [vmem:[%s2812_s1 + $0x70] sm:$0xf0]  ;;  %v2967_v2 = vor.u32 %v2324_v61, %v2173_v62  ;;  %s3066_s19 = scalar_lea.vmem %s3415_s4, %s418_s17 }
  0x47   : > { %698 = vmatpush.bf16.msra.mxu2 %v2071_v9  ;;  %v2956_v60 = vor.u32 %v2335_v58, %v2215_v57  ;;  %v2965_v1 = vor.u32 %v2332_v0, %v2203_v63  ;;  %v2191_v3 = vld [vmem:[%s2812_s1 + $0x50] sm:$0xf]  ;;  %v2329_v4 = vld [vmem:[%s2812_s1 + $0x58] sm:$0xf0]  ;;  %v2161_v6 = vld [vmem:[%s2812_s1 + $0x24] sm:$0xf0] }
  0x48   : > { %v2321_v5 = vld [vmem:[%s2812_s1 + $0x1c] sm:$0xf]  ;;  %v2977_v8 = vor.u32 %v2329_v4, %v2191_v3  ;;  %v2318_v10 = vld [vmem:[%s2812_s1 + $0x4] sm:$0xf]  ;;  %v2149_v11 = vld [vmem:[%s2812_s1 + $0xc] sm:$0xf0] }
  0x49   : > { %641 = vmatpush.bf16.msra.mxu0 %v2051_v16  ;;  %922 = vmatpush.bf16.msra.mxu3 %v2891_v23  ;;  %v2979_v9 = vor.u32 %v2321_v5, %v2161_v6  ;;  %v2179_v12 = vld [vmem:[%s2812_s1 + $0x38] sm:$0xf]  ;;  %v2326_v13 = vld [vmem:[%s2812_s1 + $0x40] sm:$0xf0]  ;;  %v2292_v14 = vld [vmem:[%s3411_s0 + $0x10] sm:$0xff]  ;;  %v2993_v15 = vor.u32 %v2318_v10, %v2149_v11  ;;  %s2372_s27 = smul.u32 3, %s418_s17 }
  0x4a   : > { %670 = vmatpush.bf16.msra.mxu1 %v2055_v18  ;;  %v2995_v16 = vor.u32 %v2326_v13, %v2179_v12  ;;  %v2167_v18 = vld [vmem:[%s2812_s1 + $0x20] sm:$0xf]  ;;  %v2155_v21 = vld [vmem:[%s2812_s1 + $0x8] sm:$0xf]  ;;  %v2293_v25 = vld [vmem:[%s3411_s0 + $0x18] sm:$0xff]  ;;  %s2030_s15 = sshll.u32 %s2801_s11, 6 }
  0x4b   : > { %699 = vmatpush.bf16.msra.mxu2 %v2059_v19  ;;  %v2323_v19 = vld [vmem:[%s2812_s1 + $0x28] sm:$0xf0]  ;;  %s420_s29 = scalar_lea.vmem %s3414_s3, %s2372_s27  ;;  %s3118_s16 = scalar_lea.vmem [#allocation9], %s2030_s15 }
  0x4c   : > { %642 = vmatmul.bf16.vlgmr.msra.gmra.mxu0 %v2290_v22  ;;  %v3002_v20 = vor.u32 %v2323_v19, %v2167_v18  ;;  %v474_v26 = vld [vmem:[%s420_s29] sm:$0x7]  ;;  %s2362_s8 = smul.u32 40, %s2663_s24 }
  0x4d   : > { %671 = vmatmul.bf16.vlgmr.msra.gmra.mxu1 %v2290_v22  ;;  %944 = vmatpush.bf16.msrb.mxu0 %v2907_v34  ;;  %v3075_v27 = vperm.slane %v474_v26, 0  ;;  %v3077_v28 = vperm.slane %v474_v26, 1  ;;  %v3081_v36 = vperm.slane %v474_v26, 2  ;;  %s2363_s28 = smul.u32 24, %s2663_s24 }
  0x4e   : > { %1023 = vmatpush.bf16.msrb.mxu1 %v2856_v53  ;;  %700 = vmatmul.bf16.vlgmr.msra.gmra.mxu2 %v2290_v22  ;;  %v2320_v22 = vld [vmem:[%s2812_s1 + $0x10] sm:$0xf0]  ;;  %s780_s1 = smul.u32 56, %s2663_s24  ;;  %s2344_s7 = sadd.s32 8, %s2362_s8 }
  0x4f   : > { %1036 = vmatpush.bf16.msrb.mxu2 %v2904_v32  ;;  %923 = vmatpush.bf16.msra.mxu3 %v2900_v29  ;;  %v3010_v24 = vor.u32 %v2320_v22, %v2155_v21  ;;  %s1014_s17 = sshra.s32 %s2344_s7, 3  ;;  %s1898_s27 = scalar_lea.vmem %s3118_s16, %s2362_s8 [#allocation9] }
  0x50   : > { %s781_s9 = sshra.s32 %s780_s1, 3  ;;  %s1009_s30 = scalar_lea.vmem %s3118_s16, %s780_s1 [#allocation9] }
  0x51   : > { %945 = vmatpush.bf16.msrb.mxu0 %v2916_v39  ;;  %s2342_s13 = smul.u32 24, %s781_s9  ;;  %s2347_s25 = sadd.s32 16, %s2363_s28 }
  0x52   : > { %1024 = vmatpush.bf16.msrb.mxu1 %v2863_v59  ;;  %s2345_s18 = smul.u32 24, %s1014_s17  ;;  %s1115_s29 = sshra.s32 %s2347_s25, 3 }
  0x53   : > { %1037 = vmatpush.bf16.msrb.mxu2 %v2922_v42  ;;  %924 = vmatpush.bf16.msra.mxu3 %v2919_v40  ;;  %s3108_s14 = scalar_lea.vmem [#allocation2], %s2342_s13  ;;  %s2348_s1 = smul.u32 24, %s1115_s29 }
  0x54   : > { %s3155_s20 = scalar_lea.vmem [#allocation2], %s2345_s18  ;;  %s1904_s13 = scalar_lea.vmem %s3118_s16, %s2363_s28 [#allocation9] }
  0x55   : > { %946 = vmatpush.bf16.msrb.mxu0 %v2956_v60  ;;  %s3197_s9 = scalar_lea.vmem [#allocation2], %s2348_s1  ;;  %s1313_s18 = ssub.s32 4, %s2663_s24 }
  0x56   : > { %1025 = vmatpush.bf16.msrb.mxu1 %v2874_v7  ;;  %s2364_s1 = smul.u32 4294967272, %s2663_s24 }
  0x57   : > { %1038 = vmatpush.bf16.msrb.mxu2 %v2933_v47  ;;  %925 = vmatpush.bf16.msra.mxu3 %v2931_v46 }
  0x59   : > { %947 = vmatpush.bf16.msrb.mxu0 %v2965_v1 }
  0x5a   : > { %1026 = vmatpush.bf16.msrb.mxu1 %v2883_v17  ;;  %926 = vmatmul.bf16.vlgmr.msra.gmra.mxu3 %v2675_v55 }
  0x5b   : > { %931 = vmatpush.bf16.msrb.mxu3 %v2904_v32  ;;  %1039 = vmatpush.bf16.msrb.mxu2 %v2943_v51 }
  0x5c   : > { %647 = vmatmul.bf16.gmra.mxu0 %v2291_v50 }
  0x5d   : > { %676 = vmatmul.bf16.gmra.mxu1 %v2291_v50  ;;  %948 = vmatpush.bf16.msrb.mxu0 %v2977_v8 }
  0x5e   : > { %1027 = vmatpush.bf16.msrb.mxu1 %v2891_v23  ;;  %705 = vmatmul.bf16.gmra.mxu2 %v2291_v50 }
  0x5f   : > { %932 = vmatpush.bf16.msrb.mxu3 %v2922_v42  ;;  %1040 = vmatpush.bf16.msrb.mxu2 %v2951_v56 }
  0x61   : > { %949 = vmatpush.bf16.msrb.mxu0 %v2995_v16 }
  0x62   : > { %1028 = vmatpush.bf16.msrb.mxu1 %v2900_v29 }
  0x63   : > { %933 = vmatpush.bf16.msrb.mxu3 %v2933_v47  ;;  %1041 = vmatpush.bf16.msrb.mxu2 %v2967_v2 }
  0x65   : > { %950 = vmatpush.bf16.msrb.mxu0 %v3002_v20 }
  0x66   : > { %1029 = vmatpush.bf16.msrb.mxu1 %v2919_v40 }
  0x67   : > { %934 = vmatpush.bf16.msrb.mxu3 %v2943_v51  ;;  %1042 = vmatpush.bf16.msrb.mxu2 %v2979_v9 }
  0x69   : > { %951 = vmatpush.bf16.msrb.mxu0 %v3010_v24 }
  0x6a   : > { %1030 = vmatpush.bf16.msrb.mxu1 %v2931_v46 }
  0x6b   : > { %935 = vmatpush.bf16.msrb.mxu3 %v2951_v56  ;;  %1043 = vmatpush.bf16.msrb.mxu2 %v2993_v15 }
  0x6c   : > { %652 = vmatmul.bf16.gmra.mxu0 %v2292_v14 }
  0x6d   : > { %681 = vmatmul.bf16.gmra.mxu1 %v2292_v14  ;;  %1124 = vmatpush.bf16.msra.mxu0 %v2856_v53 }
  0x6e   : > { %1137 = vmatpush.bf16.msra.mxu1 %v2904_v32  ;;  %710 = vmatmul.bf16.gmra.mxu2 %v2292_v14 }
  0x6f   : > { %1150 = vmatpush.bf16.msra.mxu2 %v2907_v34  ;;  %936 = vmatpush.bf16.msrb.mxu3 %v2967_v2 }
  0x71   : > { %1125 = vmatpush.bf16.msra.mxu0 %v2863_v59 }
  0x72   : > { %1138 = vmatpush.bf16.msra.mxu1 %v2922_v42 }
  0x73   : > { %1151 = vmatpush.bf16.msra.mxu2 %v2916_v39  ;;  %937 = vmatpush.bf16.msrb.mxu3 %v2979_v9 }
  0x75   : > { %1126 = vmatpush.bf16.msra.mxu0 %v2874_v7 }
  0x76   : > { %1139 = vmatpush.bf16.msra.mxu1 %v2933_v47 }
  0x77   : > { %1152 = vmatpush.bf16.msra.mxu2 %v2956_v60  ;;  %938 = vmatpush.bf16.msrb.mxu3 %v2993_v15 }
  0x79   : > { %1127 = vmatpush.bf16.msra.mxu0 %v2883_v17 }
  0x7a   : > { %1140 = vmatpush.bf16.msra.mxu1 %v2943_v51  ;;  %939 = vmatmul.bf16.vlgmr.msrb.gmra.mxu3 %v2675_v55 }
  0x7b   : > { %1049 = vmatpush.bf16.msra.mxu3 %v2907_v34  ;;  %1153 = vmatpush.bf16.msra.mxu2 %v2965_v1 }
  0x7c   : > { %657 = vmatmul.bf16.gmra.mxu0 %v2293_v25 }
  0x7d   : > { %686 = vmatmul.bf16.gmra.mxu1 %v2293_v25  ;;  %1128 = vmatpush.bf16.msra.mxu0 %v2891_v23 }
  0x7e   : > { %715 = vmatmul.bf16.gmra.mxu2 %v2293_v25  ;;  %1141 = vmatpush.bf16.msra.mxu1 %v2951_v56 }
  0x7f   : > { %1050 = vmatpush.bf16.msra.mxu3 %v2916_v39  ;;  %1154 = vmatpush.bf16.msra.mxu2 %v2977_v8 }
  0x81   : > { %1129 = vmatpush.bf16.msra.mxu0 %v2900_v29 }
  0x82   : > { %1142 = vmatpush.bf16.msra.mxu1 %v2967_v2 }
  0x83   : > { %1051 = vmatpush.bf16.msra.mxu3 %v2956_v60  ;;  %1155 = vmatpush.bf16.msra.mxu2 %v2995_v16 }
  0x85   : > { %1130 = vmatpush.bf16.msra.mxu0 %v2919_v40 }
  0x86   : > { %1143 = vmatpush.bf16.msra.mxu1 %v2979_v9 }
  0x87   : > { %1052 = vmatpush.bf16.msra.mxu3 %v2965_v1  ;;  %1156 = vmatpush.bf16.msra.mxu2 %v3002_v20 }
  0x89   : > { %1131 = vmatpush.bf16.msra.mxu0 %v2931_v46 }
  0x8a   : > { %1144 = vmatpush.bf16.msra.mxu1 %v2993_v15 }
  0x8b   : > { %1053 = vmatpush.bf16.msra.mxu3 %v2977_v8  ;;  %1157 = vmatpush.bf16.msra.mxu2 %v3010_v24 }
  0x8c   : > { %952 = vmatmul.bf16.vlgmr.msrb.gmra.mxu0 %v2675_v55 }
  0x8d   : > { %1237 = vmatpush.bf16.msrb.mxu0 %v2904_v32 }
  0x8f   : > { %1054 = vmatpush.bf16.msra.mxu3 %v2995_v16 }
  0x91   : > { %1238 = vmatpush.bf16.msrb.mxu0 %v2922_v42 }
  0x93   : > { %1055 = vmatpush.bf16.msra.mxu3 %v3002_v20 }
  0x95   : > { %1239 = vmatpush.bf16.msrb.mxu0 %v2933_v47 }
  0x97   : > { %1056 = vmatpush.bf16.msra.mxu3 %v3010_v24 }
  0x99   : > { %1240 = vmatpush.bf16.msrb.mxu0 %v2943_v51 }
  0x9b   : > { %1224 = vmatpush.bf16.msrb.mxu3 %v2856_v53 }
  0x9d   : > { %1241 = vmatpush.bf16.msrb.mxu0 %v2951_v56 }
  0x9f   : > { %1225 = vmatpush.bf16.msrb.mxu3 %v2863_v59 }
  0xa1   : > { %1242 = vmatpush.bf16.msrb.mxu0 %v2967_v2 }
  0xa3   : > { %1226 = vmatpush.bf16.msrb.mxu3 %v2874_v7 }
  0xa5   : > { %1243 = vmatpush.bf16.msrb.mxu0 %v2979_v9 }
  0xa7   : > { %1227 = vmatpush.bf16.msrb.mxu3 %v2883_v17 }
  0xa9   : > { %1244 = vmatpush.bf16.msrb.mxu0 %v2993_v15 }
  0xab   : > { %1228 = vmatpush.bf16.msrb.mxu3 %v2891_v23 }
  0xaf   : > { %1229 = vmatpush.bf16.msrb.mxu3 %v2900_v29 }
  0xb3   : > { %1230 = vmatpush.bf16.msrb.mxu3 %v2919_v40 }
  0xb7   : > { %1231 = vmatpush.bf16.msrb.mxu3 %v2931_v46 }
  0xc9   : > { %v643_v30 = vpop.f32.mrf.mxu0 }
  0xca   : > { %v644_v31 = vadd.f32 %v643_v30, %v3075_v27  ;;  %v672_v33 = vpop.f32.mrf.mxu1 }
  0xcb   : > { %v673_v35 = vadd.f32 %v672_v33, %v3077_v28 }
  0xcc   : > { %721 = vst [vmem:[#allocation2] sm:$0xff] %v644_v31 }
  0xcd   : > { %722 = vst [vmem:[#allocation2 + $0x8] sm:$0xff] %v673_v35 }
  0xd1   : > { %v701_v37 = vpop.f32.mrf.mxu2  ;;  %v645_v41 = vpop.f32.mrf.mxu0 }
  0xd2   : > { %v702_v38 = vadd.f32 %v701_v37, %v3081_v36  ;;  %v646_v43 = vadd.f32 %v645_v41, %v3075_v27  ;;  %v674_v44 = vpop.f32.mrf.mxu1 }
  0xd3   : > { %v675_v45 = vadd.f32 %v674_v44, %v3077_v28 }
  0xd4   : > { %723 = vst [vmem:[#allocation2 + $0x10] sm:$0xff] %v702_v38 }
  0xd5   : > { %724 = vst [vmem:[#allocation2 + $0x18] sm:$0xff] %v646_v43 }
  0xd6   : > { %725 = vst [vmem:[#allocation2 + $0x20] sm:$0xff] %v675_v45 }
  0xd9   : > { %v703_v48 = vpop.f32.mrf.mxu2  ;;  %v648_v50 = vpop.f32.mrf.mxu0 }
  0xda   : > { %v704_v49 = vadd.f32 %v703_v48, %v3081_v36  ;;  %v649_v52 = vadd.f32 %v648_v50, %v3075_v27  ;;  %v677_v54 = vpop.f32.mrf.mxu1 }
  0xdb   : > { %v678_v55 = vadd.f32 %v677_v54, %v3077_v28 }
  0xdc   : > { %726 = vst [vmem:[#allocation2 + $0x28] sm:$0xff] %v704_v49 }
  0xdd   : > { %727 = vst [vmem:[#allocation2 + $0x30] sm:$0xff] %v649_v52  ;;  %v927_v0 = vpop.f32.mrf.mxu3 }
  0xde   : > { %728 = vst [vmem:[#allocation2 + $0x38] sm:$0xff] %v678_v55 }
  0xe1   : > { %v706_v57 = vpop.f32.mrf.mxu2  ;;  %v650_v61 = vpop.f32.mrf.mxu0 }
  0xe2   : > { %v707_v58 = vadd.f32 %v706_v57, %v3081_v36  ;;  %v651_v62 = vadd.f32 %v650_v61, %v3075_v27  ;;  %v679_v63 = vpop.f32.mrf.mxu1 }
  0xe3   : > { %v680_v3 = vadd.f32 %v679_v63, %v3077_v28 }
  0xe4   : > { %729 = vst [vmem:[#allocation2 + $0x40] sm:$0xff] %v707_v58 }
  0xe5   : > { %730 = vst [vmem:[#allocation2 + $0x48] sm:$0xff] %v651_v62  ;;  %v929_v12 = vpop.f32.mrf.mxu3 }
  0xe6   : > { %731 = vst [vmem:[#allocation2 + $0x50] sm:$0xff] %v680_v3 }
  0xe9   : > { %v708_v4 = vpop.f32.mrf.mxu2  ;;  %v653_v6 = vpop.f32.mrf.mxu0 }
  0xea   : > { %v709_v5 = vadd.f32 %v708_v4, %v3081_v36  ;;  %v654_v10 = vadd.f32 %v653_v6, %v3075_v27  ;;  %v682_v11 = vpop.f32.mrf.mxu1 }
  0xeb   : > { %v683_v13 = vadd.f32 %v682_v11, %v3077_v28 }
  0xec   : > { %732 = vst [vmem:[#allocation2 + $0x58] sm:$0xff] %v709_v5 }
  0xed   : > { %733 = vst [vmem:[#allocation2 + $0x60] sm:$0xff] %v654_v10 }
  0xee   : > { %734 = vst [vmem:[#allocation2 + $0x68] sm:$0xff] %v683_v13 }
  0xf1   : > { %v711_v14 = vpop.f32.mrf.mxu2  ;;  %v655_v19 = vpop.f32.mrf.mxu0 }
  0xf2   : > { %v712_v18 = vadd.f32 %v711_v14, %v3081_v36  ;;  %v656_v21 = vadd.f32 %v655_v19, %v3075_v27  ;;  %v684_v22 = vpop.f32.mrf.mxu1 }
  0xf3   : > { %v685_v25 = vadd.f32 %v684_v22, %v3077_v28 }
  0xf4   : > { %735 = vst [vmem:[#allocation2 + $0x70] sm:$0xff] %v712_v18  ;;  %v3113_v18 = vld [vmem:[%s3066_s19] ss:$0 sm:$0xff] }
  0xf5   : > { %736 = vst [vmem:[#allocation2 + $0x78] sm:$0xff] %v656_v21 }
  0xf6   : > { %737 = vst [vmem:[#allocation2 + $0x80] sm:$0xff] %v685_v25 }
  0xf9   : > { %v713_v26 = vpop.f32.mrf.mxu2  ;;  %v658_v31 = vpop.f32.mrf.mxu0 }
  0xfa   : > { %v714_v30 = vadd.f32 %v713_v26, %v3081_v36  ;;  %v659_v33 = vadd.f32 %v658_v31, %v3075_v27  ;;  %v687_v35 = vpop.f32.mrf.mxu1 }
  0xfb   : > { %v688_v37 = vadd.f32 %v687_v35, %v3077_v28 }
  0xfc   : > { %738 = vst [vmem:[#allocation2 + $0x88] sm:$0xff] %v714_v30 }
  0xfd   : > { %739 = vst [vmem:[#allocation2 + $0x90] sm:$0xff] %v659_v33  ;;  %v940_v38 = vpop.f32.mrf.mxu3 }
  0xfe   : > { %740 = vst [vmem:[#allocation2 + $0x98] sm:$0xff] %v688_v37 }
 0x101   : > { %v716_v41 = vpop.f32.mrf.mxu2  ;;  %v660_v44 = vpop.f32.mrf.mxu0 }
 0x102   : > { %v717_v43 = vadd.f32 %v716_v41, %v3081_v36  ;;  %v661_v45 = vadd.f32 %v660_v44, %v3075_v27  ;;  %v689_v48 = vpop.f32.mrf.mxu1 }
 0x103   : > { %v690_v49 = vadd.f32 %v689_v48, %v3077_v28 }
 0x104   : > { %741 = vst [vmem:[#allocation2 + $0xa0] sm:$0xff] %v717_v43 }
 0x105   : > { %742 = vst [vmem:[#allocation2 + $0xa8] sm:$0xff] %v661_v45  ;;  %v942_v50 = vpop.f32.mrf.mxu3 }
 0x106   : > { %743 = vst [vmem:[#allocation2 + $0xb0] sm:$0xff] %v690_v49 }
 0x109   : > { %v718_v52 = vpop.f32.mrf.mxu2  ;;  %v953_v55 = vpop.f32.mrf.mxu0 }
 0x10a   : > { %v719_v54 = vadd.f32 %v718_v52, %v3081_v36  ;;  %v1000_v26 = vadd.f32 %v3113_v18, %v953_v55 }
 0x10c   : > { %744 = vst [vmem:[#allocation2 + $0xb8] sm:$0xff] %v719_v54 }
 0x111   : > { %v955_v57 = vpop.f32.mrf.mxu0 }
 0x113   : > { %v787_v27 = vld [vmem:[%s3108_s14 + $0x8] sm:$0xff]  ;;  %v786_v58 = vld [vmem:[%s3108_s14] sm:$0xff]  ;;  %v788_v41 = vld [vmem:[%s3108_s14 + $0x10] sm:$0xff]  ;;  %s3237_s14 = sshll.u32 %s2663_s24, 3 }
 0x114   : > { %v977_v28 = vadd.f32 %v940_v38, %v787_v27  ;;  %v957_v61 = vadd.f32 %v927_v0, %v786_v58  ;;  %v1019_v58 = vld [vmem:[%s3155_s20] sm:$0xff]  ;;  %s2350_s15 = sadd.s32 24, %s3237_s14  ;;  %s1909_s17 = scalar_lea.vmem %s3118_s16, %s3237_s14 [#allocation9] }
 0x116   : > { %v2242_v62 = vmul.f32 -1.442695, %v977_v28  ;;  %v2241_v63 = vmul.f32 -1.442695, %v957_v61 }
 0x118   : > { %2444 = vpow2.f32 %v2242_v62 }
 0x119   : > { %2446 = vpow2.f32 %v2241_v63  ;;  %v1020_v63 = vld [vmem:[%s3155_s20 + $0x8] sm:$0xff] }
 0x11e   : > { %v2445_v3 = vpop.eup %2444 }
 0x11f   : > { %v2447_v4 = vpop.eup %2446  ;;  %v981_v36 = vadd.f32 1.0, %v2445_v3 }
 0x120   : > { %v961_v5 = vadd.f32 1.0, %v2447_v4 }
 0x121   : > { %2448 = vrcp.f32 %v981_v36  ;;  %v993_v37 = vand.u32 2147483648, %v981_v36  ;;  %vm987_vm5 = vweird.f32 %v981_v36  ;;  %v991_v43 = vand.u32 2147483647, %v981_v36 }
 0x122   : > { %2450 = vrcp.f32 %v961_v5  ;;  %v973_v0 = vand.u32 2147483648, %v961_v5  ;;  %v971_v21 = vand.u32 2147483647, %v961_v5  ;;  %vm967_vm1 = vweird.f32 %v961_v5 }
 0x123   : > { %v994_v48 = vor.u32 1.1754944e-38, %v993_v37  ;;  %vm992_vm7 = vcmp.eq.f32.partialorder %v991_v43, 8.507059e+37 }
 0x124   : > { %v974_v30 = vor.u32 1.1754944e-38, %v973_v0  ;;  %vm972_vm3 = vcmp.eq.f32.partialorder %v971_v21, 8.507059e+37 }
 0x127   : > { %v2449_v6 = vpop.eup %2448 }
 0x128   : > { %v2451_v10 = vpop.eup %2450  ;;  %v983_v11 = vmul.f32 %v2449_v6, %v981_v36  ;;  %vm988_vm4 = vweird.f32 %v2449_v6 }
 0x129   : > { %v963_v12 = vmul.f32 %v2451_v10, %v961_v5  ;;  %vm968_vm0 = vweird.f32 %v2451_v10  ;;  %vm989_vm6 = vmor %vm987_vm5, %vm988_vm4 }
 0x12a   : > { %v984_v13 = vsub.f32 1.0, %v983_v11  ;;  %vm969_vm2 = vmor %vm967_vm1, %vm968_vm0 }
 0x12b   : > { %v964_v14 = vsub.f32 1.0, %v963_v12 }
 0x12c   : > { %v985_v22 = vmul.f32 %v2449_v6, %v984_v13 }
 0x12d   : > { %v965_v19 = vmul.f32 %v2451_v10, %v964_v14 }
 0x12e   : > { %v986_v35 = vadd.f32 %v2449_v6, %v985_v22 }
 0x12f   : > { %v966_v25 = vadd.f32 %v2451_v10, %v965_v19 }
 0x130   : > { %v990_v45 = vsel %vm989_vm6, %v2449_v6, %v986_v35 }
 0x131   : > { %v970_v31 = vsel %vm969_vm2, %v2451_v10, %v966_v25  ;;  %v995_v49 = vsel %vm992_vm7, %v994_v48, %v990_v45 }
 0x132   : > { %v975_v33 = vsel %vm972_vm3, %v974_v30, %v970_v31  ;;  %v1004_v50 = vsub.f32 1.0, %v995_v49  ;;  %v1006_v55 = vmul.f32 0.0, %v995_v49 }
 0x133   : > { %v1001_v38 = vmul.f32 %v1000_v26, %v975_v33 }
 0x135   : > { %v1002_v44 = vadd.f32 %v1001_v38, %v788_v41 }
 0x137   : > { %2452 = vtanh.f32 %v1002_v44 }
 0x13d   : > { %v2453_v52 = vpop.eup %2452 }
 0x13e   : > { %v1005_v54 = vmul.f32 %v2453_v52, %v1004_v50  ;;  %v1021_v52 = vld [vmem:[%s3155_s20 + $0x10] sm:$0xff]  ;;  %s3279_s20 = sshll.u32 %s1313_s18, 3 }
 0x13f   : > { %s1411_s29 = scalar_lea.vmem %s3118_s16, %s3279_s20 [#allocation9] }
 0x140   : > { %v3123_v57 = vadd.f32 %v1006_v55, %v1005_v54 }
 0x142   : > { %1010 = vst [vmem:[%s1009_s30] sm:$0xff] %v3123_v57  ;;  %v1022_v27 = vpack.c.bf16 %v3123_v57, %v3123_v57  ;;  %s1215_s30 = sshra.s32 %s2350_s15, 3 }
 0x143   : > { %s2351_s8 = smul.u32 24, %s1215_s30 }
 0x144   : > { %1031 = vmatmul.bf16.vlgmr.msrb.gmra.mxu1 %v1022_v27  ;;  %1044 = vmatmul.bf16.vlgmr.msrb.gmra.mxu2 %v1022_v27 }
 0x145   : > { %1057 = vmatmul.bf16.vlgmr.msra.gmra.mxu3 %v1022_v27  ;;  %1250 = vmatpush.bf16.msrb.mxu1 %v2907_v34  ;;  %s3240_s7 = scalar_lea.vmem [#allocation2], %s2351_s8  ;;  %s1919_s8 = scalar_lea.vmem %s3118_s16, %s2364_s1 [#allocation9] }
 0x146   : > { %1324 = vmatpush.bf16.msrb.mxu2 %v2856_v53  ;;  %1337 = vmatpush.bf16.msra.mxu3 %v2904_v32 }
 0x149   : > { %1251 = vmatpush.bf16.msrb.mxu1 %v2916_v39 }
 0x14a   : > { %1325 = vmatpush.bf16.msrb.mxu2 %v2863_v59  ;;  %1338 = vmatpush.bf16.msra.mxu3 %v2922_v42 }
 0x14d   : > { %1252 = vmatpush.bf16.msrb.mxu1 %v2956_v60 }
 0x14e   : > { %1326 = vmatpush.bf16.msrb.mxu2 %v2874_v7  ;;  %1339 = vmatpush.bf16.msra.mxu3 %v2933_v47 }
 0x151   : > { %1253 = vmatpush.bf16.msrb.mxu1 %v2965_v1 }
 0x152   : > { %1327 = vmatpush.bf16.msrb.mxu2 %v2883_v17  ;;  %1340 = vmatpush.bf16.msra.mxu3 %v2943_v51 }
 0x155   : > { %1254 = vmatpush.bf16.msrb.mxu1 %v2977_v8 }
 0x156   : > { %1328 = vmatpush.bf16.msrb.mxu2 %v2891_v23  ;;  %1341 = vmatpush.bf16.msra.mxu3 %v2951_v56 }
 0x159   : > { %1255 = vmatpush.bf16.msrb.mxu1 %v2995_v16 }
 0x15a   : > { %1329 = vmatpush.bf16.msrb.mxu2 %v2900_v29  ;;  %1342 = vmatpush.bf16.msra.mxu3 %v2967_v2 }
 0x15d   : > { %1256 = vmatpush.bf16.msrb.mxu1 %v3002_v20 }
 0x15e   : > { %1330 = vmatpush.bf16.msrb.mxu2 %v2919_v40  ;;  %1343 = vmatpush.bf16.msra.mxu3 %v2979_v9 }
 0x161   : > { %1257 = vmatpush.bf16.msrb.mxu1 %v3010_v24 }
 0x162   : > { %1331 = vmatpush.bf16.msrb.mxu2 %v2931_v46  ;;  %1344 = vmatpush.bf16.msra.mxu3 %v2993_v15 }
 0x1c1   : > { %v1032_v28 = vpop.f32.mrf.mxu1 }
 0x1c2   : > { %v1062_v61 = vadd.f32 %v1032_v28, %v1019_v58 }
 0x1c4   : > { %v2246_v62 = vmul.f32 -1.442695, %v1062_v61 }
 0x1c6   : > { %2454 = vpow2.f32 %v2246_v62 }
 0x1c7   : > { %v1045_v3 = vpop.f32.mrf.mxu2 }
 0x1c8   : > { %v1082_v4 = vadd.f32 %v1045_v3, %v1020_v63  ;;  %v1058_v36 = vpop.f32.mrf.mxu3 }
 0x1c9   : > { %v1034_v5 = vpop.f32.mrf.mxu1  ;;  %v1102_v43 = vadd.f32 %v3113_v18, %v1058_v36 }
 0x1ca   : > { %v2247_v6 = vmul.f32 -1.442695, %v1082_v4 }
 0x1cc   : > { %v2455_v10 = vpop.eup %2454  ;;  %2456 = vpow2.f32 %v2247_v6  ;;  %v1121_v6 = vld [vmem:[%s3197_s9 + $0x8] sm:$0xff] }
 0x1cd   : > { %v1066_v11 = vadd.f32 1.0, %v2455_v10 }
 0x1cf   : > { %2458 = vrcp.f32 %v1066_v11  ;;  %v1047_v12 = vpop.f32.mrf.mxu2  ;;  %v1078_v25 = vand.u32 2147483648, %v1066_v11  ;;  %v1076_v30 = vand.u32 2147483647, %v1066_v11  ;;  %vm1072_vm9 = vweird.f32 %v1066_v11 }
 0x1d0   : > { %v1060_v13 = vpop.f32.mrf.mxu3 }
 0x1d1   : > { %v1079_v37 = vor.u32 1.1754944e-38, %v1078_v25  ;;  %vm1077_vm11 = vcmp.eq.f32.partialorder %v1076_v30, 8.507059e+37 }
 0x1d2   : > { %v2457_v14 = vpop.eup %2456 }
 0x1d3   : > { %v1086_v0 = vadd.f32 1.0, %v2457_v14 }
 0x1d5   : > { %v2459_v19 = vpop.eup %2458  ;;  %2460 = vrcp.f32 %v1086_v0  ;;  %v1098_v48 = vand.u32 2147483648, %v1086_v0  ;;  %v1096_v50 = vand.u32 2147483647, %v1086_v0  ;;  %vm1092_vm13 = vweird.f32 %v1086_v0 }
 0x1d6   : > { %v1068_v21 = vmul.f32 %v2459_v19, %v1066_v11  ;;  %vm1073_vm8 = vweird.f32 %v2459_v19 }
 0x1d7   : > { %vm1074_vm10 = vmor %vm1072_vm9, %vm1073_vm8  ;;  %v1099_v27 = vor.u32 1.1754944e-38, %v1098_v48  ;;  %vm1097_vm15 = vcmp.eq.f32.partialorder %v1096_v50, 8.507059e+37 }
 0x1d8   : > { %v1069_v22 = vsub.f32 1.0, %v1068_v21 }
 0x1da   : > { %v1070_v26 = vmul.f32 %v2459_v19, %v1069_v22 }
 0x1db   : > { %v2461_v31 = vpop.eup %2460 }
 0x1dc   : > { %v1088_v33 = vmul.f32 %v2461_v31, %v1086_v0  ;;  %v1071_v35 = vadd.f32 %v2459_v19, %v1070_v26  ;;  %vm1093_vm12 = vweird.f32 %v2461_v31 }
 0x1dd   : > { %vm1094_vm14 = vmor %vm1092_vm13, %vm1093_vm12 }
 0x1de   : > { %v1089_v38 = vsub.f32 1.0, %v1088_v33  ;;  %v1075_v41 = vsel %vm1074_vm10, %v2459_v19, %v1071_v35 }
 0x1df   : > { %v1080_v44 = vsel %vm1077_vm11, %v1079_v37, %v1075_v41 }
 0x1e0   : > { %v1090_v45 = vmul.f32 %v2461_v31, %v1089_v38  ;;  %v1103_v49 = vmul.f32 %v1102_v43, %v1080_v44 }
 0x1e2   : > { %v1091_v54 = vadd.f32 %v2461_v31, %v1090_v45  ;;  %v1104_v55 = vadd.f32 %v1103_v49, %v1021_v52 }
 0x1e4   : > { %v1095_v58 = vsel %vm1094_vm14, %v2461_v31, %v1091_v54  ;;  %2462 = vtanh.f32 %v1104_v55 }
 0x1e5   : > { %v1100_v28 = vsel %vm1097_vm15, %v1099_v27, %v1095_v58 }
 0x1e6   : > { %v1106_v61 = vsub.f32 1.0, %v1100_v28  ;;  %v1108_v3 = vmul.f32 %v1100_v28, %v3123_v57  ;;  %v1120_v57 = vld [vmem:[%s3197_s9] sm:$0xff] }
 0x1ea   : > { %v2463_v62 = vpop.eup %2462 }
 0x1eb   : > { %v1107_v63 = vmul.f32 %v2463_v62, %v1106_v61 }
 0x1ed   : > { %v3165_v4 = vadd.f32 %v1108_v3, %v1107_v63  ;;  %v1122_v63 = vld [vmem:[%s3197_s9 + $0x10] sm:$0xff]  ;;  %s2354_s9 = sadd.s32 40, %s2364_s1 }
 0x1ef   : > { %2249 = vst [vmem:[%s1898_s27 + $0x8] sm:$0xff] %v3165_v4  ;;  %v1123_v36 = vpack.c.bf16 %v3165_v4, %v3165_v4  ;;  %s1315_s27 = sshra.s32 %s3279_s20, 3 }
 0x1f0   : > { %s2352_s28 = smul.u32 24, %s1315_s27 }
 0x1f1   : > { %1132 = vmatmul.bf16.vlgmr.msra.gmra.mxu0 %v1123_v36  ;;  %1145 = vmatmul.bf16.vlgmr.msra.gmra.mxu1 %v1123_v36 }
 0x1f2   : > { %1158 = vmatmul.bf16.vlgmr.msra.gmra.mxu2 %v1123_v36  ;;  %1350 = vmatpush.bf16.msra.mxu0 %v2907_v34  ;;  %s3282_s25 = scalar_lea.vmem [#allocation2], %s2352_s28  ;;  %s2366_s28 = smul.u32 4294967240, %s2663_s24 }
 0x1f3   : > { %1425 = vmatpush.bf16.msra.mxu1 %v2856_v53  ;;  %1438 = vmatpush.bf16.msra.mxu2 %v2904_v32 }
 0x1f6   : > { %1351 = vmatpush.bf16.msra.mxu0 %v2916_v39 }
 0x1f7   : > { %1426 = vmatpush.bf16.msra.mxu1 %v2863_v59  ;;  %1439 = vmatpush.bf16.msra.mxu2 %v2922_v42 }
 0x1fa   : > { %1352 = vmatpush.bf16.msra.mxu0 %v2956_v60 }
 0x1fb   : > { %1427 = vmatpush.bf16.msra.mxu1 %v2874_v7  ;;  %1440 = vmatpush.bf16.msra.mxu2 %v2933_v47 }
 0x1fe   : > { %1353 = vmatpush.bf16.msra.mxu0 %v2965_v1 }
 0x1ff   : > { %1428 = vmatpush.bf16.msra.mxu1 %v2883_v17  ;;  %1441 = vmatpush.bf16.msra.mxu2 %v2943_v51 }
 0x202   : > { %1354 = vmatpush.bf16.msra.mxu0 %v2977_v8 }
 0x203   : > { %1429 = vmatpush.bf16.msra.mxu1 %v2891_v23  ;;  %1442 = vmatpush.bf16.msra.mxu2 %v2951_v56 }
 0x206   : > { %1355 = vmatpush.bf16.msra.mxu0 %v2995_v16 }
 0x207   : > { %1430 = vmatpush.bf16.msra.mxu1 %v2900_v29  ;;  %1443 = vmatpush.bf16.msra.mxu2 %v2967_v2 }
 0x20a   : > { %1356 = vmatpush.bf16.msra.mxu0 %v3002_v20 }
 0x20b   : > { %1431 = vmatpush.bf16.msra.mxu1 %v2919_v40  ;;  %1444 = vmatpush.bf16.msra.mxu2 %v2979_v9 }
 0x20e   : > { %1357 = vmatpush.bf16.msra.mxu0 %v3010_v24 }
 0x20f   : > { %1432 = vmatpush.bf16.msra.mxu1 %v2931_v46  ;;  %1445 = vmatpush.bf16.msra.mxu2 %v2993_v15 }
 0x26e   : > { %v1133_v5 = vpop.f32.mrf.mxu0  ;;  %v1146_v10 = vpop.f32.mrf.mxu1 }
 0x26f   : > { %v1163_v11 = vadd.f32 %v1133_v5, %v1120_v57  ;;  %v1183_v12 = vadd.f32 %v1146_v10, %v1121_v6 }
 0x271   : > { %v2252_v13 = vmul.f32 -1.442695, %v1163_v11  ;;  %v2253_v14 = vmul.f32 -1.442695, %v1183_v12 }
 0x273   : > { %2464 = vpow2.f32 %v2252_v13 }
 0x274   : > { %2466 = vpow2.f32 %v2253_v14 }
 0x275   : > { %v1159_v0 = vpop.f32.mrf.mxu2 }
 0x276   : > { %v1135_v19 = vpop.f32.mrf.mxu0  ;;  %v1148_v21 = vpop.f32.mrf.mxu1  ;;  %v1203_v55 = vadd.f32 %v3113_v18, %v1159_v0 }
 0x279   : > { %v2465_v22 = vpop.eup %2464 }
 0x27a   : > { %v2467_v25 = vpop.eup %2466  ;;  %v1167_v26 = vadd.f32 1.0, %v2465_v22 }
 0x27b   : > { %v1187_v30 = vadd.f32 1.0, %v2467_v25  ;;  %v1220_v25 = vld [vmem:[%s3240_s7] sm:$0xff] }
 0x27c   : > { %2468 = vrcp.f32 %v1167_v26  ;;  %v1179_v44 = vand.u32 2147483648, %v1167_v26  ;;  %v1177_v48 = vand.u32 2147483647, %v1167_v26  ;;  %vm1173_vm1 = vweird.f32 %v1167_v26 }
 0x27d   : > { %2470 = vrcp.f32 %v1187_v30  ;;  %v1161_v31 = vpop.f32.mrf.mxu2  ;;  %v1199_v28 = vand.u32 2147483648, %v1187_v30  ;;  %vm1193_vm5 = vweird.f32 %v1187_v30  ;;  %v1197_v62 = vand.u32 2147483647, %v1187_v30 }
 0x27e   : > { %v1180_v52 = vor.u32 1.1754944e-38, %v1179_v44  ;;  %vm1178_vm3 = vcmp.eq.f32.partialorder %v1177_v48, 8.507059e+37 }
 0x27f   : > { %v1200_v57 = vor.u32 1.1754944e-38, %v1199_v28  ;;  %vm1198_vm7 = vcmp.eq.f32.partialorder %v1197_v62, 8.507059e+37 }
 0x282   : > { %v2469_v33 = vpop.eup %2468 }
 0x283   : > { %v2471_v35 = vpop.eup %2470  ;;  %v1169_v37 = vmul.f32 %v2469_v33, %v1167_v26  ;;  %vm1174_vm0 = vweird.f32 %v2469_v33 }
 0x284   : > { %v1189_v38 = vmul.f32 %v2471_v35, %v1187_v30  ;;  %vm1175_vm2 = vmor %vm1173_vm1, %vm1174_vm0  ;;  %vm1194_vm4 = vweird.f32 %v2471_v35 }
 0x285   : > { %v1170_v41 = vsub.f32 1.0, %v1169_v37  ;;  %vm1195_vm6 = vmor %vm1193_vm5, %vm1194_vm4 }
 0x286   : > { %v1190_v43 = vsub.f32 1.0, %v1189_v38 }
 0x287   : > { %v1171_v45 = vmul.f32 %v2469_v33, %v1170_v41 }
 0x288   : > { %v1191_v49 = vmul.f32 %v2471_v35, %v1190_v43 }
 0x289   : > { %v1172_v50 = vadd.f32 %v2469_v33, %v1171_v45 }
 0x28a   : > { %v1192_v27 = vadd.f32 %v2471_v35, %v1191_v49 }
 0x28b   : > { %v1176_v54 = vsel %vm1175_vm2, %v2469_v33, %v1172_v50 }
 0x28c   : > { %v1181_v58 = vsel %vm1178_vm3, %v1180_v52, %v1176_v54  ;;  %v1196_v36 = vsel %vm1195_vm6, %v2471_v35, %v1192_v27 }
 0x28d   : > { %v1204_v61 = vmul.f32 %v1203_v55, %v1181_v58  ;;  %v1201_v5 = vsel %vm1198_vm7, %v1200_v57, %v1196_v36 }
 0x28e   : > { %v1207_v6 = vsub.f32 1.0, %v1201_v5  ;;  %v1209_v12 = vmul.f32 %v1201_v5, %v3165_v4  ;;  %v1221_v4 = vld [vmem:[%s3240_s7 + $0x8] sm:$0xff] }
 0x28f   : > { %v1205_v3 = vadd.f32 %v1204_v61, %v1122_v63 }
 0x291   : > { %2472 = vtanh.f32 %v1205_v3 }
 0x297   : > { %v2473_v10 = vpop.eup %2472 }
 0x298   : > { %v1208_v11 = vmul.f32 %v2473_v10, %v1207_v6 }
 0x29a   : > { %v3207_v13 = vadd.f32 %v1209_v12, %v1208_v11  ;;  %v1222_v11 = vld [vmem:[%s3240_s7 + $0x10] sm:$0xff]  ;;  %s2365_s7 = smul.u32 4294967256, %s2663_s24  ;;  %s1741_s24 = scalar_lea.vmem (%p2762_p9), %s3416_s5, %s3237_s14 }
 0x29c   : > { %2255 = vst [vmem:[%s1904_s13 + $0x10] sm:$0xff] %v3207_v13  ;;  %v1223_v14 = vpack.c.bf16 %v3207_v13, %v3207_v13  ;;  %s1416_s13 = sshra.s32 %s2354_s9, 3 }
 0x29d   : > { %s2355_s15 = smul.u32 24, %s1416_s13  ;;  %s2031_s13 = sshll.u32 %s2801_s11, 3 }
 0x29e   : > { %1232 = vmatmul.bf16.vlgmr.msrb.gmra.mxu3 %v1223_v14  ;;  %1245 = vmatmul.bf16.vlgmr.msrb.gmra.mxu0 %v1223_v14 }
 0x29f   : > { %1258 = vmatmul.bf16.vlgmr.msrb.gmra.mxu1 %v1223_v14  ;;  %1451 = vmatpush.bf16.msrb.mxu3 %v2907_v34  ;;  %s3307_s30 = scalar_lea.vmem [#allocation2], %s2355_s15  ;;  %s1931_s15 = scalar_lea.vmem %s3118_s16, %s2366_s28 [#allocation9] }
 0x2a0   : > { %1526 = vmatpush.bf16.msrb.mxu0 %v2856_v53  ;;  %1539 = vmatpush.bf16.msrb.mxu1 %v2904_v32 }
 0x2a3   : > { %1452 = vmatpush.bf16.msrb.mxu3 %v2916_v39 }
 0x2a4   : > { %1527 = vmatpush.bf16.msrb.mxu0 %v2863_v59  ;;  %1540 = vmatpush.bf16.msrb.mxu1 %v2922_v42 }
 0x2a7   : > { %1453 = vmatpush.bf16.msrb.mxu3 %v2956_v60 }
 0x2a8   : > { %1528 = vmatpush.bf16.msrb.mxu0 %v2874_v7  ;;  %1541 = vmatpush.bf16.msrb.mxu1 %v2933_v47 }
 0x2ab   : > { %1454 = vmatpush.bf16.msrb.mxu3 %v2965_v1 }
 0x2ac   : > { %1529 = vmatpush.bf16.msrb.mxu0 %v2883_v17  ;;  %1542 = vmatpush.bf16.msrb.mxu1 %v2943_v51 }
 0x2af   : > { %1455 = vmatpush.bf16.msrb.mxu3 %v2977_v8 }
 0x2b0   : > { %1530 = vmatpush.bf16.msrb.mxu0 %v2891_v23  ;;  %1543 = vmatpush.bf16.msrb.mxu1 %v2951_v56 }
 0x2b3   : > { %1456 = vmatpush.bf16.msrb.mxu3 %v2995_v16 }
 0x2b4   : > { %1531 = vmatpush.bf16.msrb.mxu0 %v2900_v29  ;;  %1544 = vmatpush.bf16.msrb.mxu1 %v2967_v2 }
 0x2b7   : > { %1457 = vmatpush.bf16.msrb.mxu3 %v3002_v20 }
 0x2b8   : > { %1532 = vmatpush.bf16.msrb.mxu0 %v2919_v40  ;;  %1545 = vmatpush.bf16.msrb.mxu1 %v2979_v9 }
 0x2bb   : > { %1458 = vmatpush.bf16.msrb.mxu3 %v3010_v24 }
 0x2bc   : > { %1533 = vmatpush.bf16.msrb.mxu0 %v2931_v46  ;;  %1546 = vmatpush.bf16.msrb.mxu1 %v2993_v15 }
 0x31b   : > { %v1246_v0 = vpop.f32.mrf.mxu0 }
 0x31c   : > { %v1283_v19 = vadd.f32 %v1246_v0, %v1221_v4  ;;  %v1259_v21 = vpop.f32.mrf.mxu1 }
 0x31d   : > { %v1303_v63 = vadd.f32 %v3113_v18, %v1259_v21 }
 0x31e   : > { %v2259_v22 = vmul.f32 -1.442695, %v1283_v19 }
 0x320   : > { %2474 = vpow2.f32 %v2259_v22 }
 0x321   : > { %v1233_v26 = vpop.f32.mrf.mxu3 }
 0x322   : > { %v1263_v30 = vadd.f32 %v1233_v26, %v1220_v25 }
 0x323   : > { %v1248_v31 = vpop.f32.mrf.mxu0 }
 0x324   : > { %v2258_v33 = vmul.f32 -1.442695, %v1263_v30  ;;  %v1261_v35 = vpop.f32.mrf.mxu1 }
 0x326   : > { %v2475_v37 = vpop.eup %2474  ;;  %2476 = vpow2.f32 %v2258_v33 }
 0x327   : > { %v1287_v38 = vadd.f32 1.0, %v2475_v37 }
 0x329   : > { %v1235_v41 = vpop.f32.mrf.mxu3  ;;  %2478 = vrcp.f32 %v1287_v38  ;;  %v1299_v5 = vand.u32 2147483648, %v1287_v38  ;;  %vm1293_vm13 = vweird.f32 %v1287_v38  ;;  %v1297_v10 = vand.u32 2147483647, %v1287_v38 }
 0x32b   : > { %v1300_v4 = vor.u32 1.1754944e-38, %v1299_v5  ;;  %vm1298_vm15 = vcmp.eq.f32.partialorder %v1297_v10, 8.507059e+37 }
 0x32c   : > { %v2477_v43 = vpop.eup %2476 }
 0x32d   : > { %v1267_v44 = vadd.f32 1.0, %v2477_v43 }
 0x32f   : > { %2480 = vrcp.f32 %v1267_v44  ;;  %v2479_v45 = vpop.eup %2478  ;;  %v1279_v55 = vand.u32 2147483648, %v1267_v44  ;;  %v1277_v58 = vand.u32 2147483647, %v1267_v44  ;;  %vm1273_vm9 = vweird.f32 %v1267_v44 }
 0x330   : > { %v1289_v48 = vmul.f32 %v2479_v45, %v1287_v38  ;;  %vm1294_vm12 = vweird.f32 %v2479_v45 }
 0x331   : > { %v1280_v62 = vor.u32 1.1754944e-38, %v1279_v55  ;;  %vm1278_vm11 = vcmp.eq.f32.partialorder %v1277_v58, 8.507059e+37  ;;  %vm1295_vm14 = vmor %vm1293_vm13, %vm1294_vm12 }
 0x332   : > { %v1290_v52 = vsub.f32 1.0, %v1289_v48 }
 0x334   : > { %v1291_v28 = vmul.f32 %v2479_v45, %v1290_v52 }
 0x335   : > { %v2481_v49 = vpop.eup %2480 }
 0x336   : > { %v1269_v50 = vmul.f32 %v2481_v49, %v1267_v44  ;;  %vm1274_vm8 = vweird.f32 %v2481_v49  ;;  %v1292_v36 = vadd.f32 %v2479_v45, %v1291_v28 }
 0x337   : > { %vm1275_vm10 = vmor %vm1273_vm9, %vm1274_vm8 }
 0x338   : > { %v1270_v54 = vsub.f32 1.0, %v1269_v50  ;;  %v1296_v14 = vsel %vm1295_vm14, %v2479_v45, %v1292_v36 }
 0x339   : > { %v1301_v0 = vsel %vm1298_vm15, %v1300_v4, %v1296_v14 }
 0x33a   : > { %v1271_v27 = vmul.f32 %v2481_v49, %v1270_v54  ;;  %v1307_v19 = vsub.f32 1.0, %v1301_v0  ;;  %v1309_v25 = vmul.f32 %v1301_v0, %v3207_v13 }
 0x33c   : > { %v1272_v61 = vadd.f32 %v2481_v49, %v1271_v27 }
 0x33e   : > { %v1276_v3 = vsel %vm1275_vm10, %v2481_v49, %v1272_v61  ;;  %v1322_v61 = vld [vmem:[%s3282_s25 + $0x10] sm:$0xff] }
 0x33f   : > { %v1281_v57 = vsel %vm1278_vm11, %v1280_v62, %v1276_v3 }
 0x340   : > { %v1304_v6 = vmul.f32 %v1303_v63, %v1281_v57 }
 0x342   : > { %v1305_v12 = vadd.f32 %v1304_v6, %v1222_v11 }
 0x344   : > { %2482 = vtanh.f32 %v1305_v12 }
 0x34a   : > { %v2483_v21 = vpop.eup %2482 }
 0x34b   : > { %v1308_v22 = vmul.f32 %v2483_v21, %v1307_v19 }
 0x34d   : > { %v3249_v26 = vadd.f32 %v1309_v25, %v1308_v22 }
 0x34f   : > { %2261 = vst [vmem:[%s1909_s17 + $0x18] sm:$0xff] %v3249_v26  ;;  %v1323_v30 = vpack.c.bf16 %v3249_v26, %v3249_v26  ;;  %s2357_s17 = sadd.s32 48, %s2365_s7 }
 0x350   : > { %s1517_s18 = sshra.s32 %s2357_s17, 3 }
 0x351   : > { %1332 = vmatmul.bf16.vlgmr.msrb.gmra.mxu2 %v1323_v30  ;;  %1345 = vmatmul.bf16.vlgmr.msra.gmra.mxu3 %v1323_v30  ;;  %s2358_s20 = smul.u32 24, %s1517_s18 }
 0x352   : > { %1358 = vmatmul.bf16.vlgmr.msra.gmra.mxu0 %v1323_v30  ;;  %1552 = vmatpush.bf16.msrb.mxu2 %v2907_v34 }
 0x353   : > { %1627 = vmatpush.bf16.msra.mxu3 %v2856_v53  ;;  %1640 = vmatpush.bf16.msra.mxu0 %v2904_v32  ;;  %s3325_s27 = scalar_lea.vmem [#allocation2], %s2358_s20 }
 0x356   : > { %1553 = vmatpush.bf16.msrb.mxu2 %v2916_v39 }
 0x357   : > { %1628 = vmatpush.bf16.msra.mxu3 %v2863_v59  ;;  %1641 = vmatpush.bf16.msra.mxu0 %v2922_v42  ;;  %v1320_v59 = vld [vmem:[%s3282_s25] sm:$0xff] }
 0x35a   : > { %1554 = vmatpush.bf16.msrb.mxu2 %v2956_v60 }
 0x35b   : > { %1629 = vmatpush.bf16.msra.mxu3 %v2874_v7  ;;  %1642 = vmatpush.bf16.msra.mxu0 %v2933_v47 }
 0x35e   : > { %1555 = vmatpush.bf16.msrb.mxu2 %v2965_v1 }
 0x35f   : > { %1630 = vmatpush.bf16.msra.mxu3 %v2883_v17  ;;  %1643 = vmatpush.bf16.msra.mxu0 %v2943_v51  ;;  %v1321_v17 = vld [vmem:[%s3282_s25 + $0x8] sm:$0xff]  ;;  %s2360_s25 = sadd.s32 56, %s2366_s28 }
 0x362   : > { %1556 = vmatpush.bf16.msrb.mxu2 %v2977_v8 }
 0x363   : > { %1631 = vmatpush.bf16.msra.mxu3 %v2891_v23  ;;  %1644 = vmatpush.bf16.msra.mxu0 %v2951_v56 }
 0x366   : > { %1557 = vmatpush.bf16.msrb.mxu2 %v2995_v16 }
 0x367   : > { %1632 = vmatpush.bf16.msra.mxu3 %v2900_v29  ;;  %1645 = vmatpush.bf16.msra.mxu0 %v2967_v2 }
 0x36a   : > { %1558 = vmatpush.bf16.msrb.mxu2 %v3002_v20 }
 0x36b   : > { %1633 = vmatpush.bf16.msra.mxu3 %v2919_v40  ;;  %1646 = vmatpush.bf16.msra.mxu0 %v2979_v9 }
 0x36e   : > { %1559 = vmatpush.bf16.msrb.mxu2 %v3010_v24 }
 0x36f   : > { %1634 = vmatpush.bf16.msra.mxu3 %v2931_v46  ;;  %1647 = vmatpush.bf16.msra.mxu0 %v2993_v15 }
 0x3cf   : > { %v1359_v53 = vpop.f32.mrf.mxu0 }
 0x3d0   : > { %v1403_v50 = vadd.f32 %v3113_v18, %v1359_v53 }
 0x3d4   : > { %v1333_v7 = vpop.f32.mrf.mxu2  ;;  %v1346_v23 = vpop.f32.mrf.mxu3 }
 0x3d5   : > { %v1363_v29 = vadd.f32 %v1333_v7, %v1320_v59  ;;  %v1383_v32 = vadd.f32 %v1346_v23, %v1321_v17 }
 0x3d7   : > { %v2264_v40 = vmul.f32 -1.442695, %v1363_v29  ;;  %v2265_v42 = vmul.f32 -1.442695, %v1383_v32  ;;  %v1361_v46 = vpop.f32.mrf.mxu0 }
 0x3d9   : > { %2484 = vpow2.f32 %v2264_v40 }
 0x3da   : > { %2486 = vpow2.f32 %v2265_v42 }
 0x3dc   : > { %v1335_v47 = vpop.f32.mrf.mxu2  ;;  %v1348_v51 = vpop.f32.mrf.mxu3 }
 0x3df   : > { %v2485_v56 = vpop.eup %2484 }
 0x3e0   : > { %v2487_v2 = vpop.eup %2486  ;;  %v1367_v9 = vadd.f32 1.0, %v2485_v56 }
 0x3e1   : > { %v1387_v15 = vadd.f32 1.0, %v2487_v2 }
 0x3e2   : > { %2488 = vrcp.f32 %v1367_v9  ;;  %v1379_v38 = vand.u32 2147483648, %v1367_v9  ;;  %v1377_v44 = vand.u32 2147483647, %v1367_v9  ;;  %vm1373_vm1 = vweird.f32 %v1367_v9 }
 0x3e3   : > { %2490 = vrcp.f32 %v1387_v15  ;;  %v1399_v58 = vand.u32 2147483648, %v1387_v15  ;;  %vm1393_vm5 = vweird.f32 %v1387_v15  ;;  %v1397_v28 = vand.u32 2147483647, %v1387_v15 }
 0x3e4   : > { %v1380_v49 = vor.u32 1.1754944e-38, %v1379_v38  ;;  %vm1378_vm3 = vcmp.eq.f32.partialorder %v1377_v44, 8.507059e+37 }
 0x3e5   : > { %v1400_v3 = vor.u32 1.1754944e-38, %v1399_v58  ;;  %vm1398_vm7 = vcmp.eq.f32.partialorder %v1397_v28, 8.507059e+37 }
 0x3e8   : > { %v2489_v13 = vpop.eup %2488 }
 0x3e9   : > { %v2491_v31 = vpop.eup %2490  ;;  %v1369_v33 = vmul.f32 %v2489_v13, %v1367_v9  ;;  %vm1374_vm0 = vweird.f32 %v2489_v13 }
 0x3ea   : > { %v1389_v35 = vmul.f32 %v2491_v31, %v1387_v15  ;;  %vm1375_vm2 = vmor %vm1373_vm1, %vm1374_vm0  ;;  %vm1394_vm4 = vweird.f32 %v2491_v31 }
 0x3eb   : > { %v1370_v37 = vsub.f32 1.0, %v1369_v33  ;;  %vm1395_vm6 = vmor %vm1393_vm5, %vm1394_vm4 }
 0x3ec   : > { %v1390_v41 = vsub.f32 1.0, %v1389_v35 }
 0x3ed   : > { %v1371_v43 = vmul.f32 %v2489_v13, %v1370_v37 }
 0x3ee   : > { %v1391_v45 = vmul.f32 %v2491_v31, %v1390_v41 }
 0x3ef   : > { %v1372_v48 = vadd.f32 %v2489_v13, %v1371_v43 }
 0x3f0   : > { %v1392_v55 = vadd.f32 %v2491_v31, %v1391_v45 }
 0x3f1   : > { %v1376_v52 = vsel %vm1375_vm2, %v2489_v13, %v1372_v48 }
 0x3f2   : > { %v1381_v54 = vsel %vm1378_vm3, %v1380_v49, %v1376_v52  ;;  %v1396_v63 = vsel %vm1395_vm6, %v2491_v31, %v1392_v55  ;;  %v1423_v31 = vld [vmem:[%s3307_s30 + $0x10] sm:$0xff] }
 0x3f3   : > { %v1404_v27 = vmul.f32 %v1403_v50, %v1381_v54  ;;  %v1401_v36 = vsel %vm1398_vm7, %v1400_v3, %v1396_v63  ;;  %v1522_v50 = vld [vmem:[%s3325_s27] sm:$0xff]  ;;  %v1523_v54 = vld [vmem:[%s3325_s27 + $0x8] sm:$0xff] }
 0x3f4   : > { %v1407_v57 = vsub.f32 1.0, %v1401_v36  ;;  %v1409_v10 = vmul.f32 %v1401_v36, %v3249_v26 }
 0x3f5   : > { %v1405_v62 = vadd.f32 %v1404_v27, %v1322_v61 }
 0x3f7   : > { %2492 = vtanh.f32 %v1405_v62 }
 0x3fd   : > { %v2493_v5 = vpop.eup %2492 }
 0x3fe   : > { %v1408_v6 = vmul.f32 %v2493_v5, %v1407_v57 }
 0x400   : > { %v3291_v11 = vadd.f32 %v1409_v10, %v1408_v6 }
 0x402   : > { %1412 = vst [vmem:[%s1411_s29] sm:$0xff] %v3291_v11  ;;  %v1424_v12 = vpack.c.bf16 %v3291_v11, %v3291_v11  ;;  %s1618_s29 = sshra.s32 %s2360_s25, 3 }
 0x403   : > { %s2361_s1 = smul.u32 24, %s1618_s29 }
 0x404   : > { %1433 = vmatmul.bf16.vlgmr.msra.gmra.mxu1 %v1424_v12  ;;  %1446 = vmatmul.bf16.vlgmr.msra.gmra.mxu2 %v1424_v12 }
 0x405   : > { %1459 = vmatmul.bf16.vlgmr.msrb.gmra.mxu3 %v1424_v12  ;;  %1653 = vmatpush.bf16.msra.mxu1 %v2907_v34  ;;  %v1421_v34 = vld [vmem:[%s3307_s30] sm:$0xff]  ;;  %s3346_s9 = scalar_lea.vmem [#allocation2], %s2361_s1 }
 0x409   : > { %1654 = vmatpush.bf16.msra.mxu1 %v2916_v39 }
 0x40d   : > { %1655 = vmatpush.bf16.msra.mxu1 %v2956_v60 }
 0x411   : > { %1656 = vmatpush.bf16.msra.mxu1 %v2965_v1 }
 0x415   : > { %1657 = vmatpush.bf16.msra.mxu1 %v2977_v8  ;;  %v1422_v8 = vld [vmem:[%s3307_s30 + $0x8] sm:$0xff]  ;;  %s402_s30 = scalar_lea.vmem [#allocation10], %s2031_s13 }
 0x419   : > { %1658 = vmatpush.bf16.msra.mxu1 %v2995_v16 }
 0x41d   : > { %1659 = vmatpush.bf16.msra.mxu1 %v3002_v20 }
 0x421   : > { %1660 = vmatpush.bf16.msra.mxu1 %v3010_v24 }
 0x481   : > { %v1434_v39 = vpop.f32.mrf.mxu1 }
 0x482   : > { %v1464_v60 = vadd.f32 %v1434_v39, %v1421_v34 }
 0x484   : > { %v2268_v1 = vmul.f32 -1.442695, %v1464_v60 }
 0x486   : > { %2494 = vpow2.f32 %v2268_v1 }
 0x487   : > { %v1447_v16 = vpop.f32.mrf.mxu2 }
 0x488   : > { %v1484_v14 = vadd.f32 %v1447_v16, %v1422_v8  ;;  %v1460_v20 = vpop.f32.mrf.mxu3 }
 0x489   : > { %v1436_v4 = vpop.f32.mrf.mxu1  ;;  %v1504_v51 = vadd.f32 %v3113_v18, %v1460_v20 }
 0x48a   : > { %v2269_v24 = vmul.f32 -1.442695, %v1484_v14 }
 0x48c   : > { %v2495_v0 = vpop.eup %2494  ;;  %2496 = vpow2.f32 %v2269_v24 }
 0x48d   : > { %v1468_v19 = vadd.f32 1.0, %v2495_v0 }
 0x48f   : > { %2498 = vrcp.f32 %v1468_v19  ;;  %v1449_v21 = vpop.f32.mrf.mxu2  ;;  %v1480_v7 = vand.u32 2147483648, %v1468_v19  ;;  %v1478_v23 = vand.u32 2147483647, %v1468_v19  ;;  %vm1474_vm9 = vweird.f32 %v1468_v19 }
 0x490   : > { %v1462_v22 = vpop.f32.mrf.mxu3 }
 0x491   : > { %v1481_v42 = vor.u32 1.1754944e-38, %v1480_v7  ;;  %vm1479_vm11 = vcmp.eq.f32.partialorder %v1478_v23, 8.507059e+37 }
 0x492   : > { %v2497_v25 = vpop.eup %2496 }
 0x493   : > { %v1488_v26 = vadd.f32 1.0, %v2497_v25 }
 0x495   : > { %v2499_v30 = vpop.eup %2498  ;;  %2500 = vrcp.f32 %v1488_v26  ;;  %v1500_v9 = vand.u32 2147483648, %v1488_v26  ;;  %v1498_v13 = vand.u32 2147483647, %v1488_v26  ;;  %vm1494_vm13 = vweird.f32 %v1488_v26 }
 0x496   : > { %v1470_v53 = vmul.f32 %v2499_v30, %v1468_v19  ;;  %vm1475_vm8 = vweird.f32 %v2499_v30  ;;  %v3330_v19 = vld [vmem:[%s3066_s19] ss:$0 sm:$0xff]  ;;  %s1925_s19 = scalar_lea.vmem %s3118_s16, %s2365_s7 [#allocation9] }
 0x497   : > { %vm1476_vm10 = vmor %vm1474_vm9, %vm1475_vm8  ;;  %v1501_v37 = vor.u32 1.1754944e-38, %v1500_v9  ;;  %vm1499_vm15 = vcmp.eq.f32.partialorder %v1498_v13, 8.507059e+37 }
 0x498   : > { %v1471_v59 = vsub.f32 1.0, %v1470_v53 }
 0x49a   : > { %v1472_v17 = vmul.f32 %v2499_v30, %v1471_v59  ;;  %v1524_v59 = vld [vmem:[%s3325_s27 + $0x10] sm:$0xff] }
 0x49b   : > { %v2501_v29 = vpop.eup %2500 }
 0x49c   : > { %v1490_v32 = vmul.f32 %v2501_v29, %v1488_v26  ;;  %v1473_v40 = vadd.f32 %v2499_v30, %v1472_v17  ;;  %vm1495_vm12 = vweird.f32 %v2501_v29 }
 0x49d   : > { %vm1496_vm14 = vmor %vm1494_vm13, %vm1495_vm12 }
 0x49e   : > { %v1491_v46 = vsub.f32 1.0, %v1490_v32  ;;  %v1477_v47 = vsel %vm1476_vm10, %v2499_v30, %v1473_v40 }
 0x49f   : > { %v1482_v56 = vsel %vm1479_vm11, %v1481_v42, %v1477_v47 }
 0x4a0   : > { %v1492_v2 = vmul.f32 %v2501_v29, %v1491_v46  ;;  %v1505_v15 = vmul.f32 %v1504_v51, %v1482_v56  ;;  %v1624_v56 = vld [vmem:[%s3346_s9 + $0x8] sm:$0xff] }
 0x4a2   : > { %v1493_v33 = vadd.f32 %v2501_v29, %v1492_v2  ;;  %v1506_v35 = vadd.f32 %v1505_v15, %v1423_v31  ;;  %v1623_v31 = vld [vmem:[%s3346_s9] sm:$0xff] }
 0x4a4   : > { %v1497_v38 = vsel %vm1496_vm14, %v2501_v29, %v1493_v33  ;;  %2502 = vtanh.f32 %v1506_v35 }
 0x4a5   : > { %v1502_v18 = vsel %vm1499_vm15, %v1501_v37, %v1497_v38 }
 0x4a6   : > { %v1508_v41 = vsub.f32 1.0, %v1502_v18  ;;  %v1510_v45 = vmul.f32 %v1502_v18, %v3291_v11 }
 0x4aa   : > { %v2503_v43 = vpop.eup %2502 }
 0x4ab   : > { %v1509_v44 = vmul.f32 %v2503_v43, %v1508_v41 }
 0x4ad   : > { %v3317_v48 = vadd.f32 %v1510_v45, %v1509_v44 }
 0x4af   : > { %2271 = vst [vmem:[%s1919_s8 + $0x28] sm:$0xff] %v3317_v48  ;;  %v1525_v49 = vpack.c.bf16 %v3317_v48, %v3317_v48  ;;  %s1726_s8 = scalar_lea.sflag [#allocation6], %s2801_s11 }
 0x4b1   : > { %1534 = vmatmul.bf16.vlgmr.msrb.gmra.mxu0 %v1525_v49  ;;  %1547 = vmatmul.bf16.vlgmr.msrb.gmra.mxu1 %v1525_v49 }
 0x4b2   : > { %1560 = vmatmul.bf16.vlgmr.msrb.gmra.mxu2 %v1525_v49 }
 0x52e   : > { %v1535_v52 = vpop.f32.mrf.mxu0  ;;  %v1548_v55 = vpop.f32.mrf.mxu1 }
 0x52f   : > { %v1565_v27 = vadd.f32 %v1535_v52, %v1522_v50  ;;  %v1585_v58 = vadd.f32 %v1548_v55, %v1523_v54 }
 0x531   : > { %v2274_v28 = vmul.f32 -1.442695, %v1565_v27  ;;  %v2275_v61 = vmul.f32 -1.442695, %v1585_v58 }
 0x533   : > { %2504 = vpow2.f32 %v2274_v28 }
 0x534   : > { %2506 = vpow2.f32 %v2275_v61 }
 0x535   : > { %v1561_v62 = vpop.f32.mrf.mxu2 }
 0x536   : > { %v1537_v63 = vpop.f32.mrf.mxu0  ;;  %v1550_v3 = vpop.f32.mrf.mxu1  ;;  %v1605_v21 = vadd.f32 %v3330_v19, %v1561_v62 }
 0x539   : > { %v2505_v36 = vpop.eup %2504 }
 0x53a   : > { %v2507_v57 = vpop.eup %2506  ;;  %v1569_v5 = vadd.f32 1.0, %v2505_v36 }
 0x53b   : > { %v1589_v6 = vadd.f32 1.0, %v2507_v57 }
 0x53c   : > { %2508 = vrcp.f32 %v1569_v5  ;;  %v1581_v8 = vand.u32 2147483648, %v1569_v5  ;;  %v1579_v14 = vand.u32 2147483647, %v1569_v5  ;;  %vm1575_vm1 = vweird.f32 %v1569_v5 }
 0x53d   : > { %2510 = vrcp.f32 %v1589_v6  ;;  %v1563_v10 = vpop.f32.mrf.mxu2  ;;  %v1601_v26 = vand.u32 2147483648, %v1589_v6  ;;  %vm1595_vm5 = vweird.f32 %v1589_v6  ;;  %v1599_v53 = vand.u32 2147483647, %v1589_v6 }
 0x53e   : > { %v1582_v24 = vor.u32 1.1754944e-38, %v1581_v8  ;;  %vm1580_vm3 = vcmp.eq.f32.partialorder %v1579_v14, 8.507059e+37 }
 0x53f   : > { %v1602_v23 = vor.u32 1.1754944e-38, %v1601_v26  ;;  %vm1600_vm7 = vcmp.eq.f32.partialorder %v1599_v53, 8.507059e+37 }
 0x542   : > { %v2509_v11 = vpop.eup %2508 }
 0x543   : > { %v2511_v12 = vpop.eup %2510  ;;  %v1571_v34 = vmul.f32 %v2509_v11, %v1569_v5  ;;  %vm1576_vm0 = vweird.f32 %v2509_v11 }
 0x544   : > { %v1591_v39 = vmul.f32 %v2511_v12, %v1589_v6  ;;  %vm1577_vm2 = vmor %vm1575_vm1, %vm1576_vm0  ;;  %vm1596_vm4 = vweird.f32 %v2511_v12 }
 0x545   : > { %v1572_v60 = vsub.f32 1.0, %v1571_v34  ;;  %vm1597_vm6 = vmor %vm1595_vm5, %vm1596_vm4  ;;  %v1625_v34 = vld [vmem:[%s3346_s9 + $0x10] sm:$0xff] }
 0x546   : > { %v1592_v1 = vsub.f32 1.0, %v1591_v39 }
 0x547   : > { %v1573_v16 = vmul.f32 %v2509_v11, %v1572_v60 }
 0x548   : > { %v1593_v20 = vmul.f32 %v2511_v12, %v1592_v1 }
 0x549   : > { %v1574_v4 = vadd.f32 %v2509_v11, %v1573_v16 }
 0x54a   : > { %v1594_v22 = vadd.f32 %v2511_v12, %v1593_v20 }
 0x54b   : > { %v1578_v0 = vsel %vm1577_vm2, %v2509_v11, %v1574_v4 }
 0x54c   : > { %v1583_v25 = vsel %vm1580_vm3, %v1582_v24, %v1578_v0  ;;  %v1598_v17 = vsel %vm1597_vm6, %v2511_v12, %v1594_v22 }
 0x54d   : > { %v1606_v30 = vmul.f32 %v1605_v21, %v1583_v25  ;;  %v1603_v29 = vsel %vm1600_vm7, %v1602_v23, %v1598_v17 }
 0x54e   : > { %v1609_v32 = vsub.f32 1.0, %v1603_v29  ;;  %v1611_v46 = vmul.f32 %v1603_v29, %v3317_v48 }
 0x54f   : > { %v1607_v7 = vadd.f32 %v1606_v30, %v1524_v59 }
 0x551   : > { %2512 = vtanh.f32 %v1607_v7 }
 0x557   : > { %v2513_v40 = vpop.eup %2512 }
 0x558   : > { %v1610_v42 = vmul.f32 %v2513_v40, %v1609_v32 }
 0x55a   : > { %v3338_v47 = vadd.f32 %v1611_v46, %v1610_v42 }
 0x55c   : > { %2277 = vst [vmem:[%s1925_s19 + $0x30] sm:$0xff] %v3338_v47  ;;  %v1626_v51 = vpack.c.bf16 %v3338_v47, %v3338_v47 }
 0x55e   : > { %1635 = vmatmul.bf16.vlgmr.msra.gmra.mxu3 %v1626_v51  ;;  %1648 = vmatmul.bf16.vlgmr.msra.gmra.mxu0 %v1626_v51 }
 0x55f   : > { %1661 = vmatmul.bf16.vlgmr.msra.gmra.mxu1 %v1626_v51 }
 0x5db   : > { %v1649_v2 = vpop.f32.mrf.mxu0 }
 0x5dc   : > { %v1686_v9 = vadd.f32 %v1649_v2, %v1624_v56  ;;  %v1662_v15 = vpop.f32.mrf.mxu1 }
 0x5dd   : > { %v1706_v36 = vadd.f32 %v3330_v19, %v1662_v15 }
 0x5de   : > { %v2281_v13 = vmul.f32 -1.442695, %v1686_v9 }
 0x5e0   : > { %2514 = vpow2.f32 %v2281_v13 }
 0x5e1   : > { %v1636_v33 = vpop.f32.mrf.mxu3 }
 0x5e2   : > { %v1666_v35 = vadd.f32 %v1636_v33, %v1623_v31 }
 0x5e3   : > { %v1651_v37 = vpop.f32.mrf.mxu0 }
 0x5e4   : > { %v2280_v38 = vmul.f32 -1.442695, %v1666_v35  ;;  %v1664_v18 = vpop.f32.mrf.mxu1 }
 0x5e6   : > { %v2515_v41 = vpop.eup %2514  ;;  %2516 = vpow2.f32 %v2280_v38 }
 0x5e7   : > { %v1690_v43 = vadd.f32 1.0, %v2515_v41 }
 0x5e9   : > { %v1638_v44 = vpop.f32.mrf.mxu3  ;;  %2518 = vrcp.f32 %v1690_v43  ;;  %v1702_v10 = vand.u32 2147483648, %v1690_v43  ;;  %vm1696_vm13 = vweird.f32 %v1690_v43  ;;  %v1700_v12 = vand.u32 2147483647, %v1690_v43 }
 0x5eb   : > { %v1703_v1 = vor.u32 1.1754944e-38, %v1702_v10  ;;  %vm1701_vm15 = vcmp.eq.f32.partialorder %v1700_v12, 8.507059e+37 }
 0x5ec   : > { %v2517_v45 = vpop.eup %2516 }
 0x5ed   : > { %v1670_v48 = vadd.f32 1.0, %v2517_v45 }
 0x5ef   : > { %2520 = vrcp.f32 %v1670_v48  ;;  %v2519_v49 = vpop.eup %2518  ;;  %v1682_v58 = vand.u32 2147483648, %v1670_v48  ;;  %v1680_v61 = vand.u32 2147483647, %v1670_v48  ;;  %vm1676_vm9 = vweird.f32 %v1670_v48 }
 0x5f0   : > { %v1692_v50 = vmul.f32 %v2519_v49, %v1690_v43  ;;  %vm1697_vm12 = vweird.f32 %v2519_v49 }
 0x5f1   : > { %v1683_v3 = vor.u32 1.1754944e-38, %v1682_v58  ;;  %vm1681_vm11 = vcmp.eq.f32.partialorder %v1680_v61, 8.507059e+37  ;;  %vm1698_vm14 = vmor %vm1696_vm13, %vm1697_vm12 }
 0x5f2   : > { %v1693_v55 = vsub.f32 1.0, %v1692_v50 }
 0x5f4   : > { %v1694_v62 = vmul.f32 %v2519_v49, %v1693_v55 }
 0x5f5   : > { %v2521_v52 = vpop.eup %2520 }
 0x5f6   : > { %v1672_v54 = vmul.f32 %v2521_v52, %v1670_v48  ;;  %vm1677_vm8 = vweird.f32 %v2521_v52  ;;  %v1695_v5 = vadd.f32 %v2519_v49, %v1694_v62 }
 0x5f7   : > { %vm1678_vm10 = vmor %vm1676_vm9, %vm1677_vm8 }
 0x5f8   : > { %v1673_v27 = vsub.f32 1.0, %v1672_v54  ;;  %v1699_v60 = vsel %vm1698_vm14, %v2519_v49, %v1695_v5 }
 0x5f9   : > { %v1704_v8 = vsel %vm1701_vm15, %v1703_v1, %v1699_v60 }
 0x5fa   : > { %v1674_v28 = vmul.f32 %v2521_v52, %v1673_v27  ;;  %v1710_v16 = vsub.f32 1.0, %v1704_v8  ;;  %v1712_v20 = vmul.f32 %v1704_v8, %v3338_v47 }
 0x5fc   : > { %v1675_v63 = vadd.f32 %v2521_v52, %v1674_v28 }
 0x5fe   : > { %v1679_v57 = vsel %vm1678_vm10, %v2521_v52, %v1675_v63 }
 0x5ff   : > { %v1684_v6 = vsel %vm1681_vm11, %v1683_v3, %v1679_v57 }
 0x600   : > { %v1707_v11 = vmul.f32 %v1706_v36, %v1684_v6 }
 0x602   : > { %v1708_v39 = vadd.f32 %v1707_v11, %v1625_v34 }
 0x604   : > { %2522 = vtanh.f32 %v1708_v39 }
 0x60a   : > { %v2523_v14 = vpop.eup %2522 }
 0x60b   : > { %v1711_v4 = vmul.f32 %v2523_v14, %v1710_v16 }
 0x60c   : > { %1732 = sbr.rel (!%p2762_p9) target bundleno = 1567 (0x61f), region = 60 }
 0x60d   : > { %v1713_v24 = vadd.f32 %v1712_v20, %v1711_v4 }
 0x60f   : > { %2283 = vst [vmem:[%s1931_s15 + $0x38] sm:$0xff] %v1713_v24 }
 0x610   : > { %1720 = vst [vmem:[%s402_s30] sm:$0xff] %v1713_v24 }
 0x616   : > { %v1784_v0 = vld [vmem:[%s3118_s16] sm:$0xff]  ;;  %v1786_v19 = vld [vmem:[%s3118_s16 + $0x8] sm:$0xff]  ;;  %v1788_v21 = vld [vmem:[%s3118_s16 + $0x10] sm:$0xff] }
 0x617   : > { %1785 = vst [vmem:[%s1741_s24] sm:$0xff] %v1784_v0  ;;  %v1790_v22 = vld [vmem:[%s3118_s16 + $0x18] sm:$0xff]  ;;  %v1792_v25 = vld [vmem:[%s3118_s16 + $0x20] sm:$0xff]  ;;  %v1794_v26 = vld [vmem:[%s3118_s16 + $0x28] sm:$0xff] }
 0x618   : > { %1787 = vst [vmem:[%s1741_s24 + $0x10] sm:$0xff] %v1786_v19  ;;  %v1796_v30 = vld [vmem:[%s3118_s16 + $0x30] sm:$0xff]  ;;  %v1798_v53 = vld [vmem:[%s3118_s16 + $0x38] sm:$0xff] }
 0x619   : > { %1789 = vst [vmem:[%s1741_s24 + $0x20] sm:$0xff] %v1788_v21 }
 0x61a   : > { %1791 = vst [vmem:[%s1741_s24 + $0x30] sm:$0xff] %v1790_v22 }
 0x61b   : > { %1793 = vst [vmem:[%s1741_s24 + $0x40] sm:$0xff] %v1792_v25 }
 0x61c   : > { %1795 = vst [vmem:[%s1741_s24 + $0x50] sm:$0xff] %v1794_v26 }
 0x61d   : > { %1797 = vst [vmem:[%s1741_s24 + $0x60] sm:$0xff] %v1796_v30 }
 0x61e   : > { %1799 = vst [vmem:[%s1741_s24 + $0x70] sm:$0xff] %v1798_v53 }
 0x61f PF: > { %s1809_s27 = scalar_lea.hbm %s3417_s6, %s3237_s14  ;;  %s1811_s19 = sshll.u32 %s402_s30, 4  ;;  %s1812_s19 = int_to_ptr.vmem [resolvable:$true] %s1811_s19 }
 0x620   : > { %s1813_s28 = sshll.u32 %s1809_s27, 4  ;;  %s2605_s9 = scalar_lea.hbm %s3417_s6, 16  ;;  %s1814_s28 = int_to_ptr.hbm [resolvable:$true] %s1813_s28 }
 0x621   : > { %s2599_s25 = sshra.s32 %s1814_s28, 4  ;;  %s2600_s25 = int_to_ptr.hbm [resolvable:$true] %s2599_s25 }
 0x622   : > { %s2601_s29 = scalar_lea.hbm %s2600_s25, 8  ;;  %p2606_p8 = scmp.lt.s32.totalorder %s2600_s25, %s3417_s6 }
 0x623   : > { %p2602_p5 = scmp.ne.s32.totalorder %s2600_s25, %s2601_s29  ;;  %p2607_p10 = scmp.lt.s32.totalorder %s2605_s9, %s2601_s29 }
 0x625   : > { %p2603_p6 = pnand %p2602_p5, %p2762_p9  ;;  %p2608_p13 = por %p2607_p10, %p2606_p8 }
 0x627   : > { %p2604_p7 = pneg %p2603_p6 }
 0x629   : > { %p2609_p0 = pnand %p2608_p13, %p2604_p7 }
 0x62b   : > { %2612 = shalt.err (!%p2609_p0)
}
 0x62c   : > { %2377 = dma.vmem_to_hbm [thread:$0]  (%p2762_p9), %s1812_s19, 128, %s1814_s28, %s1726_s8  }
 0x62d PF: > { %s1832_s14 = sand.u32 1, %s2651_s21   ;;  %p2387_p1 = pnand %p2025_p12, %p2769_p11 }
 0x62e   : > { %s1833_s30 = scalar_lea.sflag [#allocation6], %s1832_s14 }
 0x62f   : > { %p2388_p2 = pneg %p2387_p1 }
 0x631   : > { %2646 = dma.done.wait (%p2388_p2), %s1833_s30, 128  }
 0x632   : > { %2648 = vsyncadd (%p2388_p2), %s1833_s30, 4294967168  ;;  %s26_s26 = sadd.s32 1, %s2671_s26   ;;  %s3430_s10 = sld [smem:[#allocation16_spill]] }
 0x633   : > { %p23_p3 = scmp.ge.s32.totalorder %s26_s26, 4   ;;  %s3431_s24 = sld [smem:[#allocation14_spill]] }
 0x634   : > { %s3432_s25 = sld [smem:[#allocation15_spill]]  ;;  %s3433_s21 = smov %s2655_s22 }
 0x635   : > { %s3434_s22 = smov %s2659_s23  ;;  %25 = sbr.rel (!%p23_p3) target bundleno = 10 (0xa), region = 181 }
 0x638   : > { %s3435_s23 = smov %s3430_s10 }
 0x63a   :  { %1839 = vsyncpa [#allocation5], 1 }
 0x63b   :  { %1841 = vsyncpa [#allocation5 + $0x1], 1 }
 0x63c   :  { %1842 = vsyncpa [#allocation8], 1 }
 0x63d   :  { %1844 = vsyncpa [#allocation8 + $0x1], 1 }
 0x63e   :  { %1845 = vsyncpa [#allocation6], 1 }
 0x63f   :  { %1847 = vsyncpa [#allocation6 + $0x1], 1 }

</bundles_post_ra>
